<compile_context>
chip_gen: v7x
topology: tpu7x:2x2x1
jax: 0.10.0
libtpu: 0.0.40
codegen_flags: <defaults>
</compile_context>

<pallas_src>
import functools
import math

import jax
import jax.numpy as jnp
from jax.experimental import pallas as pl
from jax.experimental.pallas import tpu as pltpu


def dsdprnn_kernel(xpf_ref, xpb_ref,            # (Tt, Bb, 4Hp) bf16  hoisted x@Wih+b, fwd / bwd chunk
                   whhf_ref, whhb_ref,          # (Hp, 4Hp) bf16      recurrent weights
                   fcwf_ref, fcwb_ref, fcb_ref, # (Hp, targ),(Hp, targ),(1, targ) f32
                   out_ref,                     # (Bb, targ) f32      log-softmax scores
                   st_ref,                      # (6, Bb, Hp) f32     carry: h_f,c_f,m_f,h_b,c_b,m_b
                   *, unroll):
    Tt, Bb, _ = xpf_ref.shape
    Hp = whhf_ref.shape[0]
    ti = pl.program_id(1)
    nt = pl.num_programs(1)

    # First time-chunk of this batch block: reset the recurrent carry.
    @pl.when(ti == 0)
    def _init():
        zeros = jnp.zeros((Bb, Hp), jnp.float32)
        ninf = jnp.full((Bb, Hp), -jnp.inf, jnp.float32)
        st_ref[0] = zeros   # h_f
        st_ref[1] = zeros   # c_f
        st_ref[2] = ninf    # max_t h_f
        st_ref[3] = zeros   # h_b
        st_ref[4] = zeros   # c_b
        st_ref[5] = ninf    # max_t h_b

    whh_f = whhf_ref[...]
    whh_b = whhb_ref[...]

    def cell(xp, h, c, whh):
        # Only the recurrent matmul is on the serial chain; the input
        # projection + bias was hoisted into `xp` (bf16, one big matmul outside).
        gates = xp.astype(jnp.float32) + jnp.dot(
            h.astype(whh.dtype), whh, preferred_element_type=jnp.float32)   # (Bb, 4Hp)
        # Gate order (i, f, o, g): one contiguous lane-aligned sigmoid over 3Hp,
        # tanh over the last Hp (no wasted sigmoid on the g quarter).
        sig = jax.nn.sigmoid(gates[:, :3 * Hp])
        i_g = sig[:, 0 * Hp:1 * Hp]
        f_g = sig[:, 1 * Hp:2 * Hp]
        o_g = sig[:, 2 * Hp:3 * Hp]
        g_g = jnp.tanh(gates[:, 3 * Hp:])
        c = f_g * c + i_g * g_g
        h = o_g * jnp.tanh(c)
        return h, c

    def step(s, carry):
        h_f, c_f, h_b, c_b = carry
        # Fused bidirectional step: two independent chains interleave under unroll.
        h_f, c_f = cell(xpf_ref[s], h_f, c_f, whh_f)
        h_b, c_b = cell(xpb_ref[Tt - 1 - s], h_b, c_b, whh_b)
        # Max-over-time accumulators live in VMEM scratch (off the serial
        # h/c register chain -> lower vreg pressure, no extra loop carries).
        st_ref[2] = jnp.maximum(st_ref[2], h_f)
        st_ref[5] = jnp.maximum(st_ref[5], h_b)
        return (h_f, c_f, h_b, c_b)

    carry0 = (st_ref[0], st_ref[1], st_ref[3], st_ref[4])
    h_f, c_f, h_b, c_b = jax.lax.fori_loop(0, Tt, step, carry0, unroll=unroll)
    st_ref[0] = h_f
    st_ref[1] = c_f
    st_ref[3] = h_b
    st_ref[4] = c_b

    # Last time-chunk: Linear + log_softmax. Split-weight dot avoids the lane
    # concat of (hmax_f, hmax_b); padded hidden rows of fc_w are zero.
    @pl.when(ti == nt - 1)
    def _finalize():
        m_f = st_ref[2]
        m_b = st_ref[5]
        logits = (jnp.dot(m_f, fcwf_ref[...], preferred_element_type=jnp.float32)
                  + jnp.dot(m_b, fcwb_ref[...], preferred_element_type=jnp.float32)
                  + fcb_ref[...])
        mx = jnp.max(logits, axis=1, keepdims=True)
        sh = logits - mx
        out_ref[...] = sh - jnp.log(jnp.sum(jnp.exp(sh), axis=1, keepdims=True))


def _round_up(x, m):
    return ((x + m - 1) // m) * m


def _vmem_budget_bytes():
    """~3/4 of physical VMEM: ~48 MiB on v7x (64 MiB), ~96 MiB on v5e/v6e (128 MiB)."""
    cap = None
    try:
        cap = int(pltpu.get_tpu_info().vmem_capacity_bytes)
        if cap <= 0:
            cap = None
    except Exception:
        cap = None
    if cap is None:
        try:
            kind = jax.devices()[0].device_kind.lower()
        except Exception:
            kind = ""
        cap = 64 * 2 ** 20 if "v7" in kind else 128 * 2 ** 20
    return (cap * 3) // 4


def _prep_gates(w, H, Hp, pad_rows_to=None):
    """(rows, 4H) in (i,f,g,o) order -> (rows[_pad], 4Hp) in (i,f,o,g) order, zero padded."""
    i = w[:, 0 * H:1 * H]
    f = w[:, 1 * H:2 * H]
    g = w[:, 2 * H:3 * H]
    o = w[:, 3 * H:4 * H]
    parts = [jnp.pad(p, ((0, 0), (0, Hp - H))) for p in (i, f, o, g)]
    out = jnp.concatenate(parts, axis=1)
    if pad_rows_to is not None and out.shape[0] < pad_rows_to:
        out = jnp.pad(out, ((0, pad_rows_to - out.shape[0]), (0, 0)))
    return out


def dsdprnn_forward(word_ids, dsdp_ids_a, dsdp_ids_b, params, *,
                    time_tile=None, batch_block=None, unroll=None):
    """word_ids/dsdp_ids_*: (B, T) int32. Returns (B, targ_size) log-probs."""
    B, T = word_ids.shape
    H = params["whh_f"].shape[0]
    targ = params["fc_w"].shape[1]
    Hp = _round_up(H, 128)                      # lane-aligned per-gate width

    # --- batch tiling: blocks of <= 64 rows, >= 2 blocks when B allows (v7x
    #     megacore gets both TensorCores busy); pad B up to a block multiple. ---
    if batch_block is None:
        if B <= 8:
            batch_block = 8
        else:
            batch_block = min(64, _round_up(-(-B // 2), 16))
    assert batch_block % 8 == 0
    B_pad = _round_up(B, batch_block)
    nb = B_pad // batch_block

    # --- time tiling from the per-generation VMEM budget; nt >= 2 so the next
    #     chunk's DMA overlaps the serial recurrence. ---
    vmem_budget = int(_vmem_budget_bytes())
    if time_tile is None:
        per_step = batch_block * 4 * Hp * 2              # bf16 xproj, one dir, one t
        cap_tt = max(1, (vmem_budget // 3) // (4 * per_step))   # 2 dirs x 2 buffers
        cap_tt = min(cap_tt, max(1, T // 2))             # force nt >= 2 when T > 1
        time_tile = 1
        for d in range(1, cap_tt + 1):
            if T % d == 0:
                time_tile = d
    assert T % time_tile == 0, "time_tile must divide T"
    # TODO(synk): pad + mask remainder time chunks to support time_tile not dividing T.
    nt = T // time_tile
    if unroll is None:
        unroll = time_tile if time_tile <= 8 else math.gcd(time_tile, 8)

    # --- embedding glue, gathered directly in TIME-MAJOR layout (no transpose
    #     of the full activation tensor); input_dropout = identity (eval). ---
    word_emb = jnp.take(params["word_table"], word_ids.T, axis=0)     # (T,B,Dw)
    demb_a = jnp.take(params["dsdp_table"], dsdp_ids_a.T, axis=0)     # (T,B,Dd)
    demb_b = jnp.take(params["dsdp_table"], dsdp_ids_b.T, axis=0)     # (T,B,Dd)
    x = jnp.concatenate([word_emb, demb_a, demb_b], axis=-1)          # (T,B,Din)
    x = x.astype(jnp.bfloat16)                                        # bf16 MXU inputs
    if B_pad != B:
        x = jnp.pad(x, ((0, 0), (0, B_pad - B), (0, 0)))

    # --- weights: gate order (i,f,o,g), per-gate width padded to Hp lanes ---
    wih_f = _prep_gates(params["wih_f"], H, Hp).astype(jnp.bfloat16)           # (Din, 4Hp)
    wih_b = _prep_gates(params["wih_b"], H, Hp).astype(jnp.bfloat16)
    b_f = _prep_gates(params["b_f"], H, Hp)                                    # (1, 4Hp) f32
    b_b = _prep_gates(params["b_b"], H, Hp)
    whh_f = _prep_gates(params["whh_f"], H, Hp, pad_rows_to=Hp).astype(jnp.bfloat16)  # (Hp,4Hp)
    whh_b = _prep_gates(params["whh_b"], H, Hp, pad_rows_to=Hp).astype(jnp.bfloat16)
    fcw_f = jnp.pad(params["fc_w"][:H], ((0, Hp - H), (0, 0)))                 # (Hp, targ)
    fcw_b = jnp.pad(params["fc_w"][H:], ((0, Hp - H), (0, 0)))
    fc_b = params["fc_b"]                                                      # (1, targ)

    # --- hoisted input projection: one big matmul PER DIRECTION (no materialize
    #     + slice copy of a fused (T,B,8H) array), streamed to the kernel in bf16. ---
    xproj_f = (jnp.einsum("tbd,dg->tbg", x, wih_f,
                          preferred_element_type=jnp.float32) + b_f).astype(jnp.bfloat16)
    xproj_b = (jnp.einsum("tbd,dg->tbg", x, wih_b,
                          preferred_element_type=jnp.float32) + b_b).astype(jnp.bfloat16)

    xp_block = (time_tile, batch_block, 4 * Hp)

    def resident(shape):
        return pl.BlockSpec(shape, lambda bi, ti: tuple(0 for _ in shape))

    grid_spec = pltpu.PrefetchScalarGridSpec(
        num_scalar_prefetch=0,
        grid=(nb, nt),
        in_specs=[
            pl.BlockSpec(xp_block, lambda bi, ti: (ti, bi, 0)),            # fwd chunks
            pl.BlockSpec(xp_block, lambda bi, ti: (nt - 1 - ti, bi, 0)),   # bwd chunks (reversed)
            resident((Hp, 4 * Hp)), resident((Hp, 4 * Hp)),
            resident((Hp, targ)), resident((Hp, targ)), resident((1, targ)),
        ],
        out_specs=pl.BlockSpec((batch_block, targ), lambda bi, ti: (bi, 0)),
        scratch_shapes=[pltpu.VMEM((6, batch_block, Hp), jnp.float32)],
    )

    out = pl.pallas_call(
        functools.partial(dsdprnn_kernel, unroll=unroll),
        out_shape=jax.ShapeDtypeStruct((B_pad, targ), jnp.float32),
        grid_spec=grid_spec,
        compiler_params=pltpu.CompilerParams(
            dimension_semantics=("parallel", "arbitrary"),   # batch blocks split over TCs
            vmem_limit_bytes=vmem_budget),
    )(xproj_f, xproj_b, whh_f, whh_b, fcw_f, fcw_b, fc_b)

    return out[:B]


def dsdprnn_reference(word_ids, dsdp_ids_a, dsdp_ids_b, params):
    """Pure-JAX reference using the same bf16 matmul-input arithmetic."""
    we = jnp.take(params["word_table"], word_ids, axis=0)
    da = jnp.take(params["dsdp_table"], dsdp_ids_a, axis=0)
    db = jnp.take(params["dsdp_table"], dsdp_ids_b, axis=0)
    x = jnp.concatenate([we, da, db], axis=-1).astype(jnp.bfloat16)   # (B,T,D)
    B, T, _ = x.shape
    H = params["whh_f"].shape[0]

    def run(wih, whh, bias, ts):
        wih = wih.astype(jnp.bfloat16)
        whh = whh.astype(jnp.bfloat16)
        h = jnp.zeros((B, H), jnp.float32)
        c = jnp.zeros((B, H), jnp.float32)
        hs = []
        for t in ts:
            gates = (jnp.dot(x[:, t, :], wih, preferred_element_type=jnp.float32)
                     + bias
                     + jnp.dot(h.astype(jnp.bfloat16), whh,
                               preferred_element_type=jnp.float32))
            i_g = jax.nn.sigmoid(gates[:, :H])
            f_g = jax.nn.sigmoid(gates[:, H:2 * H])
            g_g = jnp.tanh(gates[:, 2 * H:3 * H])
            o_g = jax.nn.sigmoid(gates[:, 3 * H:])
            c = f_g * c + i_g * g_g
            h = o_g * jnp.tanh(c)
            hs.append(h)
        return jnp.max(jnp.stack(hs), axis=0)

    hmax_f = run(params["wih_f"], params["whh_f"], params["b_f"], range(T))
    hmax_b = run(params["wih_b"], params["whh_b"], params["b_b"],
                 range(T - 1, -1, -1))
    feat = jnp.concatenate([hmax_f, hmax_b], axis=-1)
    logits = feat @ params["fc_w"] + params["fc_b"]
    return jax.nn.log_softmax(logits, axis=1)


def make_params(key, *, word_size, word_dim, dsdp_size, dsdp_dim,
                rnn_hidden_dim, targ_size):
    H = rnn_hidden_dim // 2                     # per-direction hidden
    d_in = word_dim + 2 * dsdp_dim
    ks = jax.random.split(key, 12)

    def u(k, shape, r):
        return jax.random.uniform(k, shape, jnp.float32, -r, r)

    inv_sqrt_h = 1.0 / jnp.sqrt(jnp.float32(H))
    word_table = jax.random.normal(ks[0], (word_size, word_dim), jnp.float32) * 0.1
    dsdp_table = jax.random.normal(ks[1], (dsdp_size, dsdp_dim), jnp.float32) * 0.1
    dsdp_table = dsdp_table.at[0].set(0.0)      # padding_idx=0

    return {
        "word_table": word_table,
        "dsdp_table": dsdp_table,
        # LSTM weights stored pre-transposed for x @ W layout (PyTorch gate
        # order i,f,g,o); bias = b_ih + b_hh
        "wih_f": u(ks[2], (d_in, 4 * H), inv_sqrt_h),
        "whh_f": u(ks[3], (H, 4 * H), inv_sqrt_h),
        "b_f":   u(ks[4], (1, 4 * H), inv_sqrt_h),
        "wih_b": u(ks[5], (d_in, 4 * H), inv_sqrt_h),
        "whh_b": u(ks[6], (H, 4 * H), inv_sqrt_h),
        "b_b":   u(ks[7], (1, 4 * H), inv_sqrt_h),
        # softmax_layer fc
        "fc_w":  u(ks[8], (rnn_hidden_dim, targ_size),
                   1.0 / jnp.sqrt(jnp.float32(rnn_hidden_dim))),
        "fc_b":  u(ks[9], (1, targ_size),
                   1.0 / jnp.sqrt(jnp.float32(rnn_hidden_dim))),
    }


if __name__ == "__main__":
    B, T = 2, 8
    word_size, word_dim = 50, 16
    dsdp_size, dsdp_dim = 10, 8
    rnn_hidden_dim = 64            # -> H = 32 per direction (padded to 128 lanes)
    targ_size = 5

    key = jax.random.PRNGKey(0)
    k_p, k_w, k_a, k_b = jax.random.split(key, 4)

    params = make_params(k_p, word_size=word_size, word_dim=word_dim,
                         dsdp_size=dsdp_size, dsdp_dim=dsdp_dim,
                         rnn_hidden_dim=rnn_hidden_dim, targ_size=targ_size)

    word_ids = jax.random.randint(k_w, (B, T), 0, word_size, dtype=jnp.int32)
    dsdp_a = jax.random.randint(k_a, (B, T), 0, dsdp_size, dtype=jnp.int32)
    dsdp_b = jax.random.randint(k_b, (B, T), 0, dsdp_size, dtype=jnp.int32)

    # Auto-derived tiling: VMEM-budgeted time_tile (forced nt >= 2), batch
    # padded to a sublane-aligned block -> exercises the streamed-carry grid.
    fwd = jax.jit(lambda w, a, b: dsdprnn_forward(w, a, b, params))
    out = jax.block_until_ready(fwd(word_ids, dsdp_a, dsdp_b))

    assert out.shape == (B, targ_size)
    # log_softmax rows must sum to ~1 in prob space
    assert jnp.allclose(jnp.sum(jnp.exp(out), axis=1), 1.0, atol=1e-3)
    # compare against a pure-JAX reference (same bf16 matmul inputs; kernel
    # additionally stores the hoisted input projection in bf16)
    ref = dsdprnn_reference(word_ids, dsdp_a, dsdp_b, params)
    err = float(jnp.max(jnp.abs(out - ref)))
    assert err < 2e-2, err
    # TODO(synk): dropout layers are identity (eval mode); rnn_layer fixed to 1;
    # ranking_loss head not implemented (softmax_layer only).
    print("KERNEL_OK")
</pallas_src>

<mosaic_0001>
module attributes {stable_mosaic.version = 11 : i64} {
  func.func @dsdprnn_kernel(%arg0: i32, %arg1: i32, %arg2: memref<4x8x512xbf16, #tpu.memory_space<vmem>>, %arg3: memref<4x8x512xbf16, #tpu.memory_space<vmem>>, %arg4: memref<128x512xbf16, #tpu.memory_space<vmem>>, %arg5: memref<128x512xbf16, #tpu.memory_space<vmem>>, %arg6: memref<128x5xf32, #tpu.memory_space<vmem>>, %arg7: memref<128x5xf32, #tpu.memory_space<vmem>>, %arg8: memref<1x5xf32, #tpu.memory_space<vmem>>, %arg9: memref<8x5xf32, #tpu.memory_space<vmem>>, %arg10: memref<6x8x128xf32, #tpu.memory_space<vmem>>) attributes {dimension_semantics = [#tpu.dimension_semantics<parallel>, #tpu.dimension_semantics<arbitrary>], iteration_bounds = array<i64: 1, 2>, scalar_prefetch = 0 : i64, scratch_operands = 1 : i64, tpu.core_type = #tpu.core_type<tc>, window_params = [{transform_indices = @transform_0, window_bounds = array<i64: 4, 8, 512>}, {transform_indices = @transform_1, window_bounds = array<i64: 4, 8, 512>}, {pipeline_mode = #tpu.pipeline_mode<synchronous>, transform_indices = @transform_2, window_bounds = array<i64: 128, 512>}, {pipeline_mode = #tpu.pipeline_mode<synchronous>, transform_indices = @transform_3, window_bounds = array<i64: 128, 512>}, {pipeline_mode = #tpu.pipeline_mode<synchronous>, transform_indices = @transform_4, window_bounds = array<i64: 128, 5>}, {pipeline_mode = #tpu.pipeline_mode<synchronous>, transform_indices = @transform_5, window_bounds = array<i64: 128, 5>}, {pipeline_mode = #tpu.pipeline_mode<synchronous>, transform_indices = @transform_6, window_bounds = array<i64: 1, 5>}, {transform_indices = @transform_7, window_bounds = array<i64: 8, 5>}]} {
    %c0_i32 = arith.constant 0 : i32
    %0 = arith.cmpi eq, %arg1, %c0_i32 : i32
    %1 = arith.extui %0 : i1 to i32
    %c0_i32_0 = arith.constant 0 : i32
    %2 = arith.cmpi ne, %1, %c0_i32_0 : i32
    scf.if %2 {
      %cst_109 = arith.constant 0.000000e+00 : f32
      %264 = vector.broadcast %cst_109 : f32 to vector<8x128xf32>
      %cst_110 = arith.constant 0xFF800000 : f32
      %265 = vector.broadcast %cst_110 : f32 to vector<8x128xf32>
      %c0_111 = arith.constant 0 : index
      %c0_112 = arith.constant 0 : index
      %c0_113 = arith.constant 0 : index
      %266 = vector.load %arg10[%c0_111, %c0_112, %c0_113] : memref<6x8x128xf32, #tpu.memory_space<vmem>>, vector<1x8x128xf32>
      %267 = vector.shape_cast %266 : vector<1x8x128xf32> to vector<8x128xf32>
      %268 = vector.shape_cast %264 : vector<8x128xf32> to vector<1x8x128xf32>
      tpu.vector_store %arg10[%c0_111, %c0_112, %c0_113], %268 {strides = array<i32>} : memref<6x8x128xf32, #tpu.memory_space<vmem>>, vector<1x8x128xf32>,
      %c1_114 = arith.constant 1 : index
      %c0_115 = arith.constant 0 : index
      %c0_116 = arith.constant 0 : index
      %269 = vector.load %arg10[%c1_114, %c0_115, %c0_116] : memref<6x8x128xf32, #tpu.memory_space<vmem>>, vector<1x8x128xf32>
      %270 = vector.shape_cast %269 : vector<1x8x128xf32> to vector<8x128xf32>
      %271 = vector.shape_cast %264 : vector<8x128xf32> to vector<1x8x128xf32>
      tpu.vector_store %arg10[%c1_114, %c0_115, %c0_116], %271 {strides = array<i32>} : memref<6x8x128xf32, #tpu.memory_space<vmem>>, vector<1x8x128xf32>,
      %c2_117 = arith.constant 2 : index
      %c0_118 = arith.constant 0 : index
      %c0_119 = arith.constant 0 : index
      %272 = vector.load %arg10[%c2_117, %c0_118, %c0_119] : memref<6x8x128xf32, #tpu.memory_space<vmem>>, vector<1x8x128xf32>
      %273 = vector.shape_cast %272 : vector<1x8x128xf32> to vector<8x128xf32>
      %274 = vector.shape_cast %265 : vector<8x128xf32> to vector<1x8x128xf32>
      tpu.vector_store %arg10[%c2_117, %c0_118, %c0_119], %274 {strides = array<i32>} : memref<6x8x128xf32, #tpu.memory_space<vmem>>, vector<1x8x128xf32>,
      %c3_120 = arith.constant 3 : index
      %c0_121 = arith.constant 0 : index
      %c0_122 = arith.constant 0 : index
      %275 = vector.load %arg10[%c3_120, %c0_121, %c0_122] : memref<6x8x128xf32, #tpu.memory_space<vmem>>, vector<1x8x128xf32>
      %276 = vector.shape_cast %275 : vector<1x8x128xf32> to vector<8x128xf32>
      %277 = vector.shape_cast %264 : vector<8x128xf32> to vector<1x8x128xf32>
      tpu.vector_store %arg10[%c3_120, %c0_121, %c0_122], %277 {strides = array<i32>} : memref<6x8x128xf32, #tpu.memory_space<vmem>>, vector<1x8x128xf32>,
      %c4_123 = arith.constant 4 : index
      %c0_124 = arith.constant 0 : index
      %c0_125 = arith.constant 0 : index
      %278 = vector.load %arg10[%c4_123, %c0_124, %c0_125] : memref<6x8x128xf32, #tpu.memory_space<vmem>>, vector<1x8x128xf32>
      %279 = vector.shape_cast %278 : vector<1x8x128xf32> to vector<8x128xf32>
      %280 = vector.shape_cast %264 : vector<8x128xf32> to vector<1x8x128xf32>
      tpu.vector_store %arg10[%c4_123, %c0_124, %c0_125], %280 {strides = array<i32>} : memref<6x8x128xf32, #tpu.memory_space<vmem>>, vector<1x8x128xf32>,
      %c5_126 = arith.constant 5 : index
      %c0_127 = arith.constant 0 : index
      %c0_128 = arith.constant 0 : index
      %281 = vector.load %arg10[%c5_126, %c0_127, %c0_128] : memref<6x8x128xf32, #tpu.memory_space<vmem>>, vector<1x8x128xf32>
      %282 = vector.shape_cast %281 : vector<1x8x128xf32> to vector<8x128xf32>
      %283 = vector.shape_cast %265 : vector<8x128xf32> to vector<1x8x128xf32>
      tpu.vector_store %arg10[%c5_126, %c0_127, %c0_128], %283 {strides = array<i32>} : memref<6x8x128xf32, #tpu.memory_space<vmem>>, vector<1x8x128xf32>,
    } else {
    }
    %c0 = arith.constant 0 : index
    %c0_1 = arith.constant 0 : index
    %3 = vector.load %arg4[%c0, %c0_1] : memref<128x512xbf16, #tpu.memory_space<vmem>>, vector<128x512xbf16>
    %c0_2 = arith.constant 0 : index
    %c0_3 = arith.constant 0 : index
    %4 = vector.load %arg5[%c0_2, %c0_3] : memref<128x512xbf16, #tpu.memory_space<vmem>>, vector<128x512xbf16>
    %c0_4 = arith.constant 0 : index
    %c0_5 = arith.constant 0 : index
    %c0_6 = arith.constant 0 : index
    %5 = vector.load %arg10[%c0_4, %c0_5, %c0_6] : memref<6x8x128xf32, #tpu.memory_space<vmem>>, vector<1x8x128xf32>
    %6 = vector.shape_cast %5 : vector<1x8x128xf32> to vector<8x128xf32>
    %c1 = arith.constant 1 : index
    %c0_7 = arith.constant 0 : index
    %c0_8 = arith.constant 0 : index
    %7 = vector.load %arg10[%c1, %c0_7, %c0_8] : memref<6x8x128xf32, #tpu.memory_space<vmem>>, vector<1x8x128xf32>
    %8 = vector.shape_cast %7 : vector<1x8x128xf32> to vector<8x128xf32>
    %c3 = arith.constant 3 : index
    %c0_9 = arith.constant 0 : index
    %c0_10 = arith.constant 0 : index
    %9 = vector.load %arg10[%c3, %c0_9, %c0_10] : memref<6x8x128xf32, #tpu.memory_space<vmem>>, vector<1x8x128xf32>
    %10 = vector.shape_cast %9 : vector<1x8x128xf32> to vector<8x128xf32>
    %c4 = arith.constant 4 : index
    %c0_11 = arith.constant 0 : index
    %c0_12 = arith.constant 0 : index
    %11 = vector.load %arg10[%c4, %c0_11, %c0_12] : memref<6x8x128xf32, #tpu.memory_space<vmem>>, vector<1x8x128xf32>
    %12 = vector.shape_cast %11 : vector<1x8x128xf32> to vector<8x128xf32>
    %c0_i32_13 = arith.constant 0 : i32
    %13 = arith.index_cast %c0_i32_13 : i32 to index
    %c0_14 = arith.constant 0 : index
    %c0_15 = arith.constant 0 : index
    %14 = vector.load %arg2[%13, %c0_14, %c0_15] : memref<4x8x512xbf16, #tpu.memory_space<vmem>>, vector<1x8x512xbf16>
    %15 = vector.shape_cast %14 : vector<1x8x512xbf16> to vector<8x512xbf16>
    %16 = arith.extf %15 : vector<8x512xbf16> to vector<8x512xf32>
    %17 = arith.truncf %6 : vector<8x128xf32> to vector<8x128xbf16>
    %cst = arith.constant dense<0.000000e+00> : vector<8x512xf32>
    %18 = tpu.matmul %17, %3, %cst {dimension_numbers = #tpu.dot_dimension_numbers<[1], [0], [0], [1], [0, 0, 1, 1], [], []>} : vector<8x128xbf16>, vector<128x512xbf16>, vector<8x512xf32> -> vector<8x512xf32>
    %19 = arith.addf %16, %18 : vector<8x512xf32>
    %20 = vector.extract_strided_slice %19 {offsets = [0, 0], sizes = [8, 384], strides = [1, 1]} : vector<8x512xf32> to vector<8x384xf32>
    %21 = arith.negf %20 : vector<8x384xf32>
    %22 = math.exp %21 : vector<8x384xf32>
    %cst_16 = arith.constant 1.000000e+00 : f32
    %23 = vector.broadcast %cst_16 : f32 to vector<8x384xf32>
    %24 = arith.addf %23, %22 : vector<8x384xf32>
    %25 = arith.divf %23, %24 : vector<8x384xf32>
    %26 = vector.extract_strided_slice %25 {offsets = [0, 0], sizes = [8, 128], strides = [1, 1]} : vector<8x384xf32> to vector<8x128xf32>
    %27 = vector.extract_strided_slice %25 {offsets = [0, 128], sizes = [8, 128], strides = [1, 1]} : vector<8x384xf32> to vector<8x128xf32>
    %28 = vector.extract_strided_slice %25 {offsets = [0, 256], sizes = [8, 128], strides = [1, 1]} : vector<8x384xf32> to vector<8x128xf32>
    %29 = vector.extract_strided_slice %19 {offsets = [0, 384], sizes = [8, 128], strides = [1, 1]} : vector<8x512xf32> to vector<8x128xf32>
    %30 = math.tanh %29 : vector<8x128xf32>
    %31 = arith.mulf %27, %8 : vector<8x128xf32>
    %32 = arith.mulf %26, %30 : vector<8x128xf32>
    %33 = arith.addf %31, %32 : vector<8x128xf32>
    %34 = math.tanh %33 : vector<8x128xf32>
    %35 = arith.mulf %28, %34 : vector<8x128xf32>
    %c3_i32 = arith.constant 3 : i32
    %36 = arith.subi %c3_i32, %c0_i32_13 : i32
    %37 = arith.index_cast %36 : i32 to index
    %c0_17 = arith.constant 0 : index
    %c0_18 = arith.constant 0 : index
    %38 = vector.load %arg3[%37, %c0_17, %c0_18] : memref<4x8x512xbf16, #tpu.memory_space<vmem>>, vector<1x8x512xbf16>
    %39 = vector.shape_cast %38 : vector<1x8x512xbf16> to vector<8x512xbf16>
    %40 = arith.extf %39 : vector<8x512xbf16> to vector<8x512xf32>
    %41 = arith.truncf %10 : vector<8x128xf32> to vector<8x128xbf16>
    %cst_19 = arith.constant dense<0.000000e+00> : vector<8x512xf32>
    %42 = tpu.matmul %41, %4, %cst_19 {dimension_numbers = #tpu.dot_dimension_numbers<[1], [0], [0], [1], [0, 0, 1, 1], [], []>} : vector<8x128xbf16>, vector<128x512xbf16>, vector<8x512xf32> -> vector<8x512xf32>
    %43 = arith.addf %40, %42 : vector<8x512xf32>
    %44 = vector.extract_strided_slice %43 {offsets = [0, 0], sizes = [8, 384], strides = [1, 1]} : vector<8x512xf32> to vector<8x384xf32>
    %45 = arith.negf %44 : vector<8x384xf32>
    %46 = math.exp %45 : vector<8x384xf32>
    %cst_20 = arith.constant 1.000000e+00 : f32
    %47 = vector.broadcast %cst_20 : f32 to vector<8x384xf32>
    %48 = arith.addf %47, %46 : vector<8x384xf32>
    %49 = arith.divf %47, %48 : vector<8x384xf32>
    %50 = vector.extract_strided_slice %49 {offsets = [0, 0], sizes = [8, 128], strides = [1, 1]} : vector<8x384xf32> to vector<8x128xf32>
    %51 = vector.extract_strided_slice %49 {offsets = [0, 128], sizes = [8, 128], strides = [1, 1]} : vector<8x384xf32> to vector<8x128xf32>
    %52 = vector.extract_strided_slice %49 {offsets = [0, 256], sizes = [8, 128], strides = [1, 1]} : vector<8x384xf32> to vector<8x128xf32>
    %53 = vector.extract_strided_slice %43 {offsets = [0, 384], sizes = [8, 128], strides = [1, 1]} : vector<8x512xf32> to vector<8x128xf32>
    %54 = math.tanh %53 : vector<8x128xf32>
    %55 = arith.mulf %51, %12 : vector<8x128xf32>
    %56 = arith.mulf %50, %54 : vector<8x128xf32>
    %57 = arith.addf %55, %56 : vector<8x128xf32>
    %58 = math.tanh %57 : vector<8x128xf32>
    %59 = arith.mulf %52, %58 : vector<8x128xf32>
    %c2 = arith.constant 2 : index
    %c0_21 = arith.constant 0 : index
    %c0_22 = arith.constant 0 : index
    %60 = vector.load %arg10[%c2, %c0_21, %c0_22] : memref<6x8x128xf32, #tpu.memory_space<vmem>>, vector<1x8x128xf32>
    %61 = vector.shape_cast %60 : vector<1x8x128xf32> to vector<8x128xf32>
    %62 = arith.maximumf %61, %35 : vector<8x128xf32>
    %c2_23 = arith.constant 2 : index
    %c0_24 = arith.constant 0 : index
    %c0_25 = arith.constant 0 : index
    %63 = vector.load %arg10[%c2_23, %c0_24, %c0_25] : memref<6x8x128xf32, #tpu.memory_space<vmem>>, vector<1x8x128xf32>
    %64 = vector.shape_cast %63 : vector<1x8x128xf32> to vector<8x128xf32>
    %65 = vector.shape_cast %62 : vector<8x128xf32> to vector<1x8x128xf32>
    tpu.vector_store %arg10[%c2_23, %c0_24, %c0_25], %65 {strides = array<i32>} : memref<6x8x128xf32, #tpu.memory_space<vmem>>, vector<1x8x128xf32>,
    %c5 = arith.constant 5 : index
    %c0_26 = arith.constant 0 : index
    %c0_27 = arith.constant 0 : index
    %66 = vector.load %arg10[%c5, %c0_26, %c0_27] : memref<6x8x128xf32, #tpu.memory_space<vmem>>, vector<1x8x128xf32>
    %67 = vector.shape_cast %66 : vector<1x8x128xf32> to vector<8x128xf32>
    %68 = arith.maximumf %67, %59 : vector<8x128xf32>
    %c5_28 = arith.constant 5 : index
    %c0_29 = arith.constant 0 : index
    %c0_30 = arith.constant 0 : index
    %69 = vector.load %arg10[%c5_28, %c0_29, %c0_30] : memref<6x8x128xf32, #tpu.memory_space<vmem>>, vector<1x8x128xf32>
    %70 = vector.shape_cast %69 : vector<1x8x128xf32> to vector<8x128xf32>
    %71 = vector.shape_cast %68 : vector<8x128xf32> to vector<1x8x128xf32>
    tpu.vector_store %arg10[%c5_28, %c0_29, %c0_30], %71 {strides = array<i32>} : memref<6x8x128xf32, #tpu.memory_space<vmem>>, vector<1x8x128xf32>,
    %c1_i32 = arith.constant 1 : i32
    %72 = arith.index_cast %c1_i32 : i32 to index
    %c0_31 = arith.constant 0 : index
    %c0_32 = arith.constant 0 : index
    %73 = vector.load %arg2[%72, %c0_31, %c0_32] : memref<4x8x512xbf16, #tpu.memory_space<vmem>>, vector<1x8x512xbf16>
    %74 = vector.shape_cast %73 : vector<1x8x512xbf16> to vector<8x512xbf16>
    %75 = arith.extf %74 : vector<8x512xbf16> to vector<8x512xf32>
    %76 = arith.truncf %35 : vector<8x128xf32> to vector<8x128xbf16>
    %cst_33 = arith.constant dense<0.000000e+00> : vector<8x512xf32>
    %77 = tpu.matmul %76, %3, %cst_33 {dimension_numbers = #tpu.dot_dimension_numbers<[1], [0], [0], [1], [0, 0, 1, 1], [], []>} : vector<8x128xbf16>, vector<128x512xbf16>, vector<8x512xf32> -> vector<8x512xf32>
    %78 = arith.addf %75, %77 : vector<8x512xf32>
    %79 = vector.extract_strided_slice %78 {offsets = [0, 0], sizes = [8, 384], strides = [1, 1]} : vector<8x512xf32> to vector<8x384xf32>
    %80 = arith.negf %79 : vector<8x384xf32>
    %81 = math.exp %80 : vector<8x384xf32>
    %cst_34 = arith.constant 1.000000e+00 : f32
    %82 = vector.broadcast %cst_34 : f32 to vector<8x384xf32>
    %83 = arith.addf %82, %81 : vector<8x384xf32>
    %84 = arith.divf %82, %83 : vector<8x384xf32>
    %85 = vector.extract_strided_slice %84 {offsets = [0, 0], sizes = [8, 128], strides = [1, 1]} : vector<8x384xf32> to vector<8x128xf32>
    %86 = vector.extract_strided_slice %84 {offsets = [0, 128], sizes = [8, 128], strides = [1, 1]} : vector<8x384xf32> to vector<8x128xf32>
    %87 = vector.extract_strided_slice %84 {offsets = [0, 256], sizes = [8, 128], strides = [1, 1]} : vector<8x384xf32> to vector<8x128xf32>
    %88 = vector.extract_strided_slice %78 {offsets = [0, 384], sizes = [8, 128], strides = [1, 1]} : vector<8x512xf32> to vector<8x128xf32>
    %89 = math.tanh %88 : vector<8x128xf32>
    %90 = arith.mulf %86, %33 : vector<8x128xf32>
    %91 = arith.mulf %85, %89 : vector<8x128xf32>
    %92 = arith.addf %90, %91 : vector<8x128xf32>
    %93 = math.tanh %92 : vector<8x128xf32>
    %94 = arith.mulf %87, %93 : vector<8x128xf32>
    %c3_i32_35 = arith.constant 3 : i32
    %95 = arith.subi %c3_i32_35, %c1_i32 : i32
    %96 = arith.index_cast %95 : i32 to index
    %c0_36 = arith.constant 0 : index
    %c0_37 = arith.constant 0 : index
    %97 = vector.load %arg3[%96, %c0_36, %c0_37] : memref<4x8x512xbf16, #tpu.memory_space<vmem>>, vector<1x8x512xbf16>
    %98 = vector.shape_cast %97 : vector<1x8x512xbf16> to vector<8x512xbf16>
    %99 = arith.extf %98 : vector<8x512xbf16> to vector<8x512xf32>
    %100 = arith.truncf %59 : vector<8x128xf32> to vector<8x128xbf16>
    %cst_38 = arith.constant dense<0.000000e+00> : vector<8x512xf32>
    %101 = tpu.matmul %100, %4, %cst_38 {dimension_numbers = #tpu.dot_dimension_numbers<[1], [0], [0], [1], [0, 0, 1, 1], [], []>} : vector<8x128xbf16>, vector<128x512xbf16>, vector<8x512xf32> -> vector<8x512xf32>
    %102 = arith.addf %99, %101 : vector<8x512xf32>
    %103 = vector.extract_strided_slice %102 {offsets = [0, 0], sizes = [8, 384], strides = [1, 1]} : vector<8x512xf32> to vector<8x384xf32>
    %104 = arith.negf %103 : vector<8x384xf32>
    %105 = math.exp %104 : vector<8x384xf32>
    %cst_39 = arith.constant 1.000000e+00 : f32
    %106 = vector.broadcast %cst_39 : f32 to vector<8x384xf32>
    %107 = arith.addf %106, %105 : vector<8x384xf32>
    %108 = arith.divf %106, %107 : vector<8x384xf32>
    %109 = vector.extract_strided_slice %108 {offsets = [0, 0], sizes = [8, 128], strides = [1, 1]} : vector<8x384xf32> to vector<8x128xf32>
    %110 = vector.extract_strided_slice %108 {offsets = [0, 128], sizes = [8, 128], strides = [1, 1]} : vector<8x384xf32> to vector<8x128xf32>
    %111 = vector.extract_strided_slice %108 {offsets = [0, 256], sizes = [8, 128], strides = [1, 1]} : vector<8x384xf32> to vector<8x128xf32>
    %112 = vector.extract_strided_slice %102 {offsets = [0, 384], sizes = [8, 128], strides = [1, 1]} : vector<8x512xf32> to vector<8x128xf32>
    %113 = math.tanh %112 : vector<8x128xf32>
    %114 = arith.mulf %110, %57 : vector<8x128xf32>
    %115 = arith.mulf %109, %113 : vector<8x128xf32>
    %116 = arith.addf %114, %115 : vector<8x128xf32>
    %117 = math.tanh %116 : vector<8x128xf32>
    %118 = arith.mulf %111, %117 : vector<8x128xf32>
    %c2_40 = arith.constant 2 : index
    %c0_41 = arith.constant 0 : index
    %c0_42 = arith.constant 0 : index
    %119 = vector.load %arg10[%c2_40, %c0_41, %c0_42] : memref<6x8x128xf32, #tpu.memory_space<vmem>>, vector<1x8x128xf32>
    %120 = vector.shape_cast %119 : vector<1x8x128xf32> to vector<8x128xf32>
    %121 = arith.maximumf %120, %94 : vector<8x128xf32>
    %c2_43 = arith.constant 2 : index
    %c0_44 = arith.constant 0 : index
    %c0_45 = arith.constant 0 : index
    %122 = vector.load %arg10[%c2_43, %c0_44, %c0_45] : memref<6x8x128xf32, #tpu.memory_space<vmem>>, vector<1x8x128xf32>
    %123 = vector.shape_cast %122 : vector<1x8x128xf32> to vector<8x128xf32>
    %124 = vector.shape_cast %121 : vector<8x128xf32> to vector<1x8x128xf32>
    tpu.vector_store %arg10[%c2_43, %c0_44, %c0_45], %124 {strides = array<i32>} : memref<6x8x128xf32, #tpu.memory_space<vmem>>, vector<1x8x128xf32>,
    %c5_46 = arith.constant 5 : index
    %c0_47 = arith.constant 0 : index
    %c0_48 = arith.constant 0 : index
    %125 = vector.load %arg10[%c5_46, %c0_47, %c0_48] : memref<6x8x128xf32, #tpu.memory_space<vmem>>, vector<1x8x128xf32>
    %126 = vector.shape_cast %125 : vector<1x8x128xf32> to vector<8x128xf32>
    %127 = arith.maximumf %126, %118 : vector<8x128xf32>
    %c5_49 = arith.constant 5 : index
    %c0_50 = arith.constant 0 : index
    %c0_51 = arith.constant 0 : index
    %128 = vector.load %arg10[%c5_49, %c0_50, %c0_51] : memref<6x8x128xf32, #tpu.memory_space<vmem>>, vector<1x8x128xf32>
    %129 = vector.shape_cast %128 : vector<1x8x128xf32> to vector<8x128xf32>
    %130 = vector.shape_cast %127 : vector<8x128xf32> to vector<1x8x128xf32>
    tpu.vector_store %arg10[%c5_49, %c0_50, %c0_51], %130 {strides = array<i32>} : memref<6x8x128xf32, #tpu.memory_space<vmem>>, vector<1x8x128xf32>,
    %c2_i32 = arith.constant 2 : i32
    %131 = arith.index_cast %c2_i32 : i32 to index
    %c0_52 = arith.constant 0 : index
    %c0_53 = arith.constant 0 : index
    %132 = vector.load %arg2[%131, %c0_52, %c0_53] : memref<4x8x512xbf16, #tpu.memory_space<vmem>>, vector<1x8x512xbf16>
    %133 = vector.shape_cast %132 : vector<1x8x512xbf16> to vector<8x512xbf16>
    %134 = arith.extf %133 : vector<8x512xbf16> to vector<8x512xf32>
    %135 = arith.truncf %94 : vector<8x128xf32> to vector<8x128xbf16>
    %cst_54 = arith.constant dense<0.000000e+00> : vector<8x512xf32>
    %136 = tpu.matmul %135, %3, %cst_54 {dimension_numbers = #tpu.dot_dimension_numbers<[1], [0], [0], [1], [0, 0, 1, 1], [], []>} : vector<8x128xbf16>, vector<128x512xbf16>, vector<8x512xf32> -> vector<8x512xf32>
    %137 = arith.addf %134, %136 : vector<8x512xf32>
    %138 = vector.extract_strided_slice %137 {offsets = [0, 0], sizes = [8, 384], strides = [1, 1]} : vector<8x512xf32> to vector<8x384xf32>
    %139 = arith.negf %138 : vector<8x384xf32>
    %140 = math.exp %139 : vector<8x384xf32>
    %cst_55 = arith.constant 1.000000e+00 : f32
    %141 = vector.broadcast %cst_55 : f32 to vector<8x384xf32>
    %142 = arith.addf %141, %140 : vector<8x384xf32>
    %143 = arith.divf %141, %142 : vector<8x384xf32>
    %144 = vector.extract_strided_slice %143 {offsets = [0, 0], sizes = [8, 128], strides = [1, 1]} : vector<8x384xf32> to vector<8x128xf32>
    %145 = vector.extract_strided_slice %143 {offsets = [0, 128], sizes = [8, 128], strides = [1, 1]} : vector<8x384xf32> to vector<8x128xf32>
    %146 = vector.extract_strided_slice %143 {offsets = [0, 256], sizes = [8, 128], strides = [1, 1]} : vector<8x384xf32> to vector<8x128xf32>
    %147 = vector.extract_strided_slice %137 {offsets = [0, 384], sizes = [8, 128], strides = [1, 1]} : vector<8x512xf32> to vector<8x128xf32>
    %148 = math.tanh %147 : vector<8x128xf32>
    %149 = arith.mulf %145, %92 : vector<8x128xf32>
    %150 = arith.mulf %144, %148 : vector<8x128xf32>
    %151 = arith.addf %149, %150 : vector<8x128xf32>
    %152 = math.tanh %151 : vector<8x128xf32>
    %153 = arith.mulf %146, %152 : vector<8x128xf32>
    %c3_i32_56 = arith.constant 3 : i32
    %154 = arith.subi %c3_i32_56, %c2_i32 : i32
    %155 = arith.index_cast %154 : i32 to index
    %c0_57 = arith.constant 0 : index
    %c0_58 = arith.constant 0 : index
    %156 = vector.load %arg3[%155, %c0_57, %c0_58] : memref<4x8x512xbf16, #tpu.memory_space<vmem>>, vector<1x8x512xbf16>
    %157 = vector.shape_cast %156 : vector<1x8x512xbf16> to vector<8x512xbf16>
    %158 = arith.extf %157 : vector<8x512xbf16> to vector<8x512xf32>
    %159 = arith.truncf %118 : vector<8x128xf32> to vector<8x128xbf16>
    %cst_59 = arith.constant dense<0.000000e+00> : vector<8x512xf32>
    %160 = tpu.matmul %159, %4, %cst_59 {dimension_numbers = #tpu.dot_dimension_numbers<[1], [0], [0], [1], [0, 0, 1, 1], [], []>} : vector<8x128xbf16>, vector<128x512xbf16>, vector<8x512xf32> -> vector<8x512xf32>
    %161 = arith.addf %158, %160 : vector<8x512xf32>
    %162 = vector.extract_strided_slice %161 {offsets = [0, 0], sizes = [8, 384], strides = [1, 1]} : vector<8x512xf32> to vector<8x384xf32>
    %163 = arith.negf %162 : vector<8x384xf32>
    %164 = math.exp %163 : vector<8x384xf32>
    %cst_60 = arith.constant 1.000000e+00 : f32
    %165 = vector.broadcast %cst_60 : f32 to vector<8x384xf32>
    %166 = arith.addf %165, %164 : vector<8x384xf32>
    %167 = arith.divf %165, %166 : vector<8x384xf32>
    %168 = vector.extract_strided_slice %167 {offsets = [0, 0], sizes = [8, 128], strides = [1, 1]} : vector<8x384xf32> to vector<8x128xf32>
    %169 = vector.extract_strided_slice %167 {offsets = [0, 128], sizes = [8, 128], strides = [1, 1]} : vector<8x384xf32> to vector<8x128xf32>
    %170 = vector.extract_strided_slice %167 {offsets = [0, 256], sizes = [8, 128], strides = [1, 1]} : vector<8x384xf32> to vector<8x128xf32>
    %171 = vector.extract_strided_slice %161 {offsets = [0, 384], sizes = [8, 128], strides = [1, 1]} : vector<8x512xf32> to vector<8x128xf32>
    %172 = math.tanh %171 : vector<8x128xf32>
    %173 = arith.mulf %169, %116 : vector<8x128xf32>
    %174 = arith.mulf %168, %172 : vector<8x128xf32>
    %175 = arith.addf %173, %174 : vector<8x128xf32>
    %176 = math.tanh %175 : vector<8x128xf32>
    %177 = arith.mulf %170, %176 : vector<8x128xf32>
    %c2_61 = arith.constant 2 : index
    %c0_62 = arith.constant 0 : index
    %c0_63 = arith.constant 0 : index
    %178 = vector.load %arg10[%c2_61, %c0_62, %c0_63] : memref<6x8x128xf32, #tpu.memory_space<vmem>>, vector<1x8x128xf32>
    %179 = vector.shape_cast %178 : vector<1x8x128xf32> to vector<8x128xf32>
    %180 = arith.maximumf %179, %153 : vector<8x128xf32>
    %c2_64 = arith.constant 2 : index
    %c0_65 = arith.constant 0 : index
    %c0_66 = arith.constant 0 : index
    %181 = vector.load %arg10[%c2_64, %c0_65, %c0_66] : memref<6x8x128xf32, #tpu.memory_space<vmem>>, vector<1x8x128xf32>
    %182 = vector.shape_cast %181 : vector<1x8x128xf32> to vector<8x128xf32>
    %183 = vector.shape_cast %180 : vector<8x128xf32> to vector<1x8x128xf32>
    tpu.vector_store %arg10[%c2_64, %c0_65, %c0_66], %183 {strides = array<i32>} : memref<6x8x128xf32, #tpu.memory_space<vmem>>, vector<1x8x128xf32>,
    %c5_67 = arith.constant 5 : index
    %c0_68 = arith.constant 0 : index
    %c0_69 = arith.constant 0 : index
    %184 = vector.load %arg10[%c5_67, %c0_68, %c0_69] : memref<6x8x128xf32, #tpu.memory_space<vmem>>, vector<1x8x128xf32>
    %185 = vector.shape_cast %184 : vector<1x8x128xf32> to vector<8x128xf32>
    %186 = arith.maximumf %185, %177 : vector<8x128xf32>
    %c5_70 = arith.constant 5 : index
    %c0_71 = arith.constant 0 : index
    %c0_72 = arith.constant 0 : index
    %187 = vector.load %arg10[%c5_70, %c0_71, %c0_72] : memref<6x8x128xf32, #tpu.memory_space<vmem>>, vector<1x8x128xf32>
    %188 = vector.shape_cast %187 : vector<1x8x128xf32> to vector<8x128xf32>
    %189 = vector.shape_cast %186 : vector<8x128xf32> to vector<1x8x128xf32>
    tpu.vector_store %arg10[%c5_70, %c0_71, %c0_72], %189 {strides = array<i32>} : memref<6x8x128xf32, #tpu.memory_space<vmem>>, vector<1x8x128xf32>,
    %c3_i32_73 = arith.constant 3 : i32
    %190 = arith.index_cast %c3_i32_73 : i32 to index
    %c0_74 = arith.constant 0 : index
    %c0_75 = arith.constant 0 : index
    %191 = vector.load %arg2[%190, %c0_74, %c0_75] : memref<4x8x512xbf16, #tpu.memory_space<vmem>>, vector<1x8x512xbf16>
    %192 = vector.shape_cast %191 : vector<1x8x512xbf16> to vector<8x512xbf16>
    %193 = arith.extf %192 : vector<8x512xbf16> to vector<8x512xf32>
    %194 = arith.truncf %153 : vector<8x128xf32> to vector<8x128xbf16>
    %cst_76 = arith.constant dense<0.000000e+00> : vector<8x512xf32>
    %195 = tpu.matmul %194, %3, %cst_76 {dimension_numbers = #tpu.dot_dimension_numbers<[1], [0], [0], [1], [0, 0, 1, 1], [], []>} : vector<8x128xbf16>, vector<128x512xbf16>, vector<8x512xf32> -> vector<8x512xf32>
    %196 = arith.addf %193, %195 : vector<8x512xf32>
    %197 = vector.extract_strided_slice %196 {offsets = [0, 0], sizes = [8, 384], strides = [1, 1]} : vector<8x512xf32> to vector<8x384xf32>
    %198 = arith.negf %197 : vector<8x384xf32>
    %199 = math.exp %198 : vector<8x384xf32>
    %cst_77 = arith.constant 1.000000e+00 : f32
    %200 = vector.broadcast %cst_77 : f32 to vector<8x384xf32>
    %201 = arith.addf %200, %199 : vector<8x384xf32>
    %202 = arith.divf %200, %201 : vector<8x384xf32>
    %203 = vector.extract_strided_slice %202 {offsets = [0, 0], sizes = [8, 128], strides = [1, 1]} : vector<8x384xf32> to vector<8x128xf32>
    %204 = vector.extract_strided_slice %202 {offsets = [0, 128], sizes = [8, 128], strides = [1, 1]} : vector<8x384xf32> to vector<8x128xf32>
    %205 = vector.extract_strided_slice %202 {offsets = [0, 256], sizes = [8, 128], strides = [1, 1]} : vector<8x384xf32> to vector<8x128xf32>
    %206 = vector.extract_strided_slice %196 {offsets = [0, 384], sizes = [8, 128], strides = [1, 1]} : vector<8x512xf32> to vector<8x128xf32>
    %207 = math.tanh %206 : vector<8x128xf32>
    %208 = arith.mulf %204, %151 : vector<8x128xf32>
    %209 = arith.mulf %203, %207 : vector<8x128xf32>
    %210 = arith.addf %208, %209 : vector<8x128xf32>
    %211 = math.tanh %210 : vector<8x128xf32>
    %212 = arith.mulf %205, %211 : vector<8x128xf32>
    %c3_i32_78 = arith.constant 3 : i32
    %213 = arith.subi %c3_i32_78, %c3_i32_73 : i32
    %214 = arith.index_cast %213 : i32 to index
    %c0_79 = arith.constant 0 : index
    %c0_80 = arith.constant 0 : index
    %215 = vector.load %arg3[%214, %c0_79, %c0_80] : memref<4x8x512xbf16, #tpu.memory_space<vmem>>, vector<1x8x512xbf16>
    %216 = vector.shape_cast %215 : vector<1x8x512xbf16> to vector<8x512xbf16>
    %217 = arith.extf %216 : vector<8x512xbf16> to vector<8x512xf32>
    %218 = arith.truncf %177 : vector<8x128xf32> to vector<8x128xbf16>
    %cst_81 = arith.constant dense<0.000000e+00> : vector<8x512xf32>
    %219 = tpu.matmul %218, %4, %cst_81 {dimension_numbers = #tpu.dot_dimension_numbers<[1], [0], [0], [1], [0, 0, 1, 1], [], []>} : vector<8x128xbf16>, vector<128x512xbf16>, vector<8x512xf32> -> vector<8x512xf32>
    %220 = arith.addf %217, %219 : vector<8x512xf32>
    %221 = vector.extract_strided_slice %220 {offsets = [0, 0], sizes = [8, 384], strides = [1, 1]} : vector<8x512xf32> to vector<8x384xf32>
    %222 = arith.negf %221 : vector<8x384xf32>
    %223 = math.exp %222 : vector<8x384xf32>
    %cst_82 = arith.constant 1.000000e+00 : f32
    %224 = vector.broadcast %cst_82 : f32 to vector<8x384xf32>
    %225 = arith.addf %224, %223 : vector<8x384xf32>
    %226 = arith.divf %224, %225 : vector<8x384xf32>
    %227 = vector.extract_strided_slice %226 {offsets = [0, 0], sizes = [8, 128], strides = [1, 1]} : vector<8x384xf32> to vector<8x128xf32>
    %228 = vector.extract_strided_slice %226 {offsets = [0, 128], sizes = [8, 128], strides = [1, 1]} : vector<8x384xf32> to vector<8x128xf32>
    %229 = vector.extract_strided_slice %226 {offsets = [0, 256], sizes = [8, 128], strides = [1, 1]} : vector<8x384xf32> to vector<8x128xf32>
    %230 = vector.extract_strided_slice %220 {offsets = [0, 384], sizes = [8, 128], strides = [1, 1]} : vector<8x512xf32> to vector<8x128xf32>
    %231 = math.tanh %230 : vector<8x128xf32>
    %232 = arith.mulf %228, %175 : vector<8x128xf32>
    %233 = arith.mulf %227, %231 : vector<8x128xf32>
    %234 = arith.addf %232, %233 : vector<8x128xf32>
    %235 = math.tanh %234 : vector<8x128xf32>
    %236 = arith.mulf %229, %235 : vector<8x128xf32>
    %c2_83 = arith.constant 2 : index
    %c0_84 = arith.constant 0 : index
    %c0_85 = arith.constant 0 : index
    %237 = vector.load %arg10[%c2_83, %c0_84, %c0_85] : memref<6x8x128xf32, #tpu.memory_space<vmem>>, vector<1x8x128xf32>
    %238 = vector.shape_cast %237 : vector<1x8x128xf32> to vector<8x128xf32>
    %239 = arith.maximumf %238, %212 : vector<8x128xf32>
    %c2_86 = arith.constant 2 : index
    %c0_87 = arith.constant 0 : index
    %c0_88 = arith.constant 0 : index
    %240 = vector.load %arg10[%c2_86, %c0_87, %c0_88] : memref<6x8x128xf32, #tpu.memory_space<vmem>>, vector<1x8x128xf32>
    %241 = vector.shape_cast %240 : vector<1x8x128xf32> to vector<8x128xf32>
    %242 = vector.shape_cast %239 : vector<8x128xf32> to vector<1x8x128xf32>
    tpu.vector_store %arg10[%c2_86, %c0_87, %c0_88], %242 {strides = array<i32>} : memref<6x8x128xf32, #tpu.memory_space<vmem>>, vector<1x8x128xf32>,
    %c5_89 = arith.constant 5 : index
    %c0_90 = arith.constant 0 : index
    %c0_91 = arith.constant 0 : index
    %243 = vector.load %arg10[%c5_89, %c0_90, %c0_91] : memref<6x8x128xf32, #tpu.memory_space<vmem>>, vector<1x8x128xf32>
    %244 = vector.shape_cast %243 : vector<1x8x128xf32> to vector<8x128xf32>
    %245 = arith.maximumf %244, %236 : vector<8x128xf32>
    %c5_92 = arith.constant 5 : index
    %c0_93 = arith.constant 0 : index
    %c0_94 = arith.constant 0 : index
    %246 = vector.load %arg10[%c5_92, %c0_93, %c0_94] : memref<6x8x128xf32, #tpu.memory_space<vmem>>, vector<1x8x128xf32>
    %247 = vector.shape_cast %246 : vector<1x8x128xf32> to vector<8x128xf32>
    %248 = vector.shape_cast %245 : vector<8x128xf32> to vector<1x8x128xf32>
    tpu.vector_store %arg10[%c5_92, %c0_93, %c0_94], %248 {strides = array<i32>} : memref<6x8x128xf32, #tpu.memory_space<vmem>>, vector<1x8x128xf32>,
    %c4_i32 = arith.constant 4 : i32
    %c0_95 = arith.constant 0 : index
    %c0_96 = arith.constant 0 : index
    %c0_97 = arith.constant 0 : index
    %249 = vector.load %arg10[%c0_95, %c0_96, %c0_97] : memref<6x8x128xf32, #tpu.memory_space<vmem>>, vector<1x8x128xf32>
    %250 = vector.shape_cast %249 : vector<1x8x128xf32> to vector<8x128xf32>
    %251 = vector.shape_cast %212 : vector<8x128xf32> to vector<1x8x128xf32>
    tpu.vector_store %arg10[%c0_95, %c0_96, %c0_97], %251 {strides = array<i32>} : memref<6x8x128xf32, #tpu.memory_space<vmem>>, vector<1x8x128xf32>,
    %c1_98 = arith.constant 1 : index
    %c0_99 = arith.constant 0 : index
    %c0_100 = arith.constant 0 : index
    %252 = vector.load %arg10[%c1_98, %c0_99, %c0_100] : memref<6x8x128xf32, #tpu.memory_space<vmem>>, vector<1x8x128xf32>
    %253 = vector.shape_cast %252 : vector<1x8x128xf32> to vector<8x128xf32>
    %254 = vector.shape_cast %210 : vector<8x128xf32> to vector<1x8x128xf32>
    tpu.vector_store %arg10[%c1_98, %c0_99, %c0_100], %254 {strides = array<i32>} : memref<6x8x128xf32, #tpu.memory_space<vmem>>, vector<1x8x128xf32>,
    %c3_101 = arith.constant 3 : index
    %c0_102 = arith.constant 0 : index
    %c0_103 = arith.constant 0 : index
    %255 = vector.load %arg10[%c3_101, %c0_102, %c0_103] : memref<6x8x128xf32, #tpu.memory_space<vmem>>, vector<1x8x128xf32>
    %256 = vector.shape_cast %255 : vector<1x8x128xf32> to vector<8x128xf32>
    %257 = vector.shape_cast %236 : vector<8x128xf32> to vector<1x8x128xf32>
    tpu.vector_store %arg10[%c3_101, %c0_102, %c0_103], %257 {strides = array<i32>} : memref<6x8x128xf32, #tpu.memory_space<vmem>>, vector<1x8x128xf32>,
    %c4_104 = arith.constant 4 : index
    %c0_105 = arith.constant 0 : index
    %c0_106 = arith.constant 0 : index
    %258 = vector.load %arg10[%c4_104, %c0_105, %c0_106] : memref<6x8x128xf32, #tpu.memory_space<vmem>>, vector<1x8x128xf32>
    %259 = vector.shape_cast %258 : vector<1x8x128xf32> to vector<8x128xf32>
    %260 = vector.shape_cast %234 : vector<8x128xf32> to vector<1x8x128xf32>
    tpu.vector_store %arg10[%c4_104, %c0_105, %c0_106], %260 {strides = array<i32>} : memref<6x8x128xf32, #tpu.memory_space<vmem>>, vector<1x8x128xf32>,
    %c1_i32_107 = arith.constant 1 : i32
    %261 = arith.cmpi eq, %arg1, %c1_i32_107 : i32
    %262 = arith.extui %261 : i1 to i32
    %c0_i32_108 = arith.constant 0 : i32
    %263 = arith.cmpi ne, %262, %c0_i32_108 : i32
    scf.if %263 {
      %c2_109 = arith.constant 2 : index
      %c0_110 = arith.constant 0 : index
      %c0_111 = arith.constant 0 : index
      %264 = vector.load %arg10[%c2_109, %c0_110, %c0_111] : memref<6x8x128xf32, #tpu.memory_space<vmem>>, vector<1x8x128xf32>
      %265 = vector.shape_cast %264 : vector<1x8x128xf32> to vector<8x128xf32>
      %c5_112 = arith.constant 5 : index
      %c0_113 = arith.constant 0 : index
      %c0_114 = arith.constant 0 : index
      %266 = vector.load %arg10[%c5_112, %c0_113, %c0_114] : memref<6x8x128xf32, #tpu.memory_space<vmem>>, vector<1x8x128xf32>
      %267 = vector.shape_cast %266 : vector<1x8x128xf32> to vector<8x128xf32>
      %c0_115 = arith.constant 0 : index
      %c0_116 = arith.constant 0 : index
      %268 = vector.load %arg6[%c0_115, %c0_116] : memref<128x5xf32, #tpu.memory_space<vmem>>, vector<128x5xf32>
      %cst_117 = arith.constant dense<0.000000e+00> : vector<8x5xf32>
      %269 = tpu.matmul %265, %268, %cst_117 {dimension_numbers = #tpu.dot_dimension_numbers<[1], [0], [0], [1], [0, 0, 1, 1], [], []>} : vector<8x128xf32>, vector<128x5xf32>, vector<8x5xf32> -> vector<8x5xf32>
      %c0_118 = arith.constant 0 : index
      %c0_119 = arith.constant 0 : index
      %270 = vector.load %arg7[%c0_118, %c0_119] : memref<128x5xf32, #tpu.memory_space<vmem>>, vector<128x5xf32>
      %cst_120 = arith.constant dense<0.000000e+00> : vector<8x5xf32>
      %271 = tpu.matmul %267, %270, %cst_120 {dimension_numbers = #tpu.dot_dimension_numbers<[1], [0], [0], [1], [0, 0, 1, 1], [], []>} : vector<8x128xf32>, vector<128x5xf32>, vector<8x5xf32> -> vector<8x5xf32>
      %272 = arith.addf %269, %271 : vector<8x5xf32>
      %c0_121 = arith.constant 0 : index
      %c0_122 = arith.constant 0 : index
      %273 = vector.load %arg8[%c0_121, %c0_122] : memref<1x5xf32, #tpu.memory_space<vmem>>, vector<1x5xf32>
      %274 = vector.broadcast %273 : vector<1x5xf32> to vector<8x5xf32>
      %275 = arith.addf %272, %274 : vector<8x5xf32>
      %cst_123 = arith.constant dense<0xFF800000> : vector<8xf32>
      %276 = vector.multi_reduction <maximumf>, %275, %cst_123 [1] : vector<8x5xf32> to vector<8xf32>
      %277 = vector.shape_cast %276 : vector<8xf32> to vector<8x1xf32>
      %278 = vector.broadcast %277 : vector<8x1xf32> to vector<8x5xf32>
      %279 = arith.subf %275, %278 : vector<8x5xf32>
      %280 = math.exp %279 : vector<8x5xf32>
      %cst_124 = arith.constant dense<0.000000e+00> : vector<8xf32>
      %281 = vector.multi_reduction <add>, %280, %cst_124 [1] : vector<8x5xf32> to vector<8xf32>
      %282 = vector.shape_cast %281 : vector<8xf32> to vector<8x1xf32>
      %283 = math.log %282 : vector<8x1xf32>
      %284 = vector.broadcast %283 : vector<8x1xf32> to vector<8x5xf32>
      %285 = arith.subf %279, %284 : vector<8x5xf32>
      %c0_125 = arith.constant 0 : index
      %c0_126 = arith.constant 0 : index
      %286 = vector.load %arg9[%c0_125, %c0_126] : memref<8x5xf32, #tpu.memory_space<vmem>>, vector<8x5xf32>
      tpu.vector_store %arg9[%c0_125, %c0_126], %285 {strides = array<i32>} : memref<8x5xf32, #tpu.memory_space<vmem>>, vector<8x5xf32>,
    } else {
    }
    return
  }
  func.func @transform_0(%arg0: i32, %arg1: i32) -> (i32, i32, i32) {
    %c0_i32 = arith.constant 0 : i32
    %c0_i32_0 = arith.constant 0 : i32
    return %arg1, %arg0, %c0_i32 : i32, i32, i32
  }
  func.func @transform_1(%arg0: i32, %arg1: i32) -> (i32, i32, i32) {
    %c1_i32 = arith.constant 1 : i32
    %0 = arith.subi %c1_i32, %arg1 : i32
    %c0_i32 = arith.constant 0 : i32
    %c0_i32_0 = arith.constant 0 : i32
    return %0, %arg0, %c0_i32 : i32, i32, i32
  }
  func.func @transform_2(%arg0: i32, %arg1: i32) -> (i32, i32) {
    %c0_i32 = arith.constant 0 : i32
    %c0_i32_0 = arith.constant 0 : i32
    %c0_i32_1 = arith.constant 0 : i32
    return %c0_i32, %c0_i32_0 : i32, i32
  }
  func.func @transform_3(%arg0: i32, %arg1: i32) -> (i32, i32) {
    %c0_i32 = arith.constant 0 : i32
    %c0_i32_0 = arith.constant 0 : i32
    %c0_i32_1 = arith.constant 0 : i32
    return %c0_i32, %c0_i32_0 : i32, i32
  }
  func.func @transform_4(%arg0: i32, %arg1: i32) -> (i32, i32) {
    %c0_i32 = arith.constant 0 : i32
    %c0_i32_0 = arith.constant 0 : i32
    %c0_i32_1 = arith.constant 0 : i32
    return %c0_i32, %c0_i32_0 : i32, i32
  }
  func.func @transform_5(%arg0: i32, %arg1: i32) -> (i32, i32) {
    %c0_i32 = arith.constant 0 : i32
    %c0_i32_0 = arith.constant 0 : i32
    %c0_i32_1 = arith.constant 0 : i32
    return %c0_i32, %c0_i32_0 : i32, i32
  }
  func.func @transform_6(%arg0: i32, %arg1: i32) -> (i32, i32) {
    %c0_i32 = arith.constant 0 : i32
    %c0_i32_0 = arith.constant 0 : i32
    %c0_i32_1 = arith.constant 0 : i32
    return %c0_i32, %c0_i32_0 : i32, i32
  }
  func.func @transform_7(%arg0: i32, %arg1: i32) -> (i32, i32) {
    %c0_i32 = arith.constant 0 : i32
    %c0_i32_0 = arith.constant 0 : i32
    return %arg0, %c0_i32 : i32, i32
  }
}

</mosaic_0001>

<bundles_post_ra>
// kernel: _lambda_.1
= control target key start
LH: loop header
LB: loop body
LE: loop exit
PB: predicated region body
PF: predicated region fallthrough
CT: control target
= control target key end

     0   :  { %s4090_s0 = inlined_call_operand.hbm [shape: bf16[8,8,512], index: 0, kind: input, shape index: {}]   ;;  %s4091_s1 = inlined_call_operand.hbm [shape: bf16[8,8,512], index: 1, kind: input, shape index: {}]   ;;  %s4092_s2 = inlined_call_operand.hbm [shape: bf16[128,512], index: 2, kind: input, shape index: {}]   ;;  %s4093_s3 = inlined_call_operand.hbm [shape: bf16[128,512], index: 3, kind: input, shape index: {}]   ;;  %s4094_s4 = inlined_call_operand.hbm [shape: f32[128,5], index: 4, kind: input, shape index: {}]   ;;  %s4095_s5 = inlined_call_operand.hbm [shape: f32[128,5], index: 5, kind: input, shape index: {}]   ;;  %s4096_s6 = inlined_call_operand.hbm [shape: f32[1,5], index: 6, kind: input, shape index: {}]   ;;  %s4097_s7 = inlined_call_operand.hbm [shape: f32[8,5], index: 7, kind: output, shape index: {}]  }
   0x1   :  { %4155 = sst [smem:[#allocation47_spill]] %s4092_s2 }
   0x2   :  { %4156 = sst [smem:[#allocation48_spill]] %s4097_s7 }
   0x3   :  { %12 = vsyncpa [#allocation4], 0 }
   0x4   :  { %14 = vsyncpa [#allocation4 + $0x1], 0 }
   0x5   :  { %15 = vsyncpa [#allocation7], 0 }
   0x6   :  { %17 = vsyncpa [#allocation7 + $0x1], 0 }
   0x7   :  { %18 = vsyncpa [#allocation10], 0 }
   0x8   :  { %19 = vsyncpa [#allocation13], 0 }
   0x9   :  { %20 = vsyncpa [#allocation5], 0  ;;  %s3224_s24 = smov 0   ;;  %s3226_s25 = smov 0  }
   0xa   :  { %s3228_s26 = smov 0   ;;  %s3230_s27 = smov 0  }
   0xb   :  { %s3232_s28 = smov 0   ;;  %s3234_s29 = smov 0  }
   0xc   :  { %s3236_s30 = smov 0   ;;  %s3238_s8 = smov 0  }
   0xd   :  { %s3240_s9 = smov 0  }
   0xe LB: > { %4157 = sst [smem:[#allocation22_spill]] %s3156_s30  ;;  %s3270_s10 = sadd.s32 4294967295, %s3164_s9   ;;  %s3164_s9 = sphi %s3240_s9, %s26_s9   ;;  %s3160_s8 = sphi %s3238_s8, %s4255_s8   ;;  %s3156_s30 = sphi %s3236_s30, %s4254_s30   ;;  %s3152_s29 = sphi %s3234_s29, %s4253_s29   ;;  %s3148_s28 = sphi %s3232_s28, %s4252_s28   ;;  %s3144_s27 = sphi %s3230_s27, %s4251_s27   ;;  %s3140_s26 = sphi %s3228_s26, %s4250_s26   ;;  %s3136_s25 = sphi %s3226_s25, %s4249_s25   ;;  %s3132_s24 = sphi %s3224_s24, %s4248_s24  }
   0xf   : > { %p2154_p0 = scmp.ge.s32.totalorder %s3164_s9, 1  ;;  %p4098_p1 = scmp.eq.s32.totalorder %s3270_s10, 0 }
  0x10   : > { %p232_p2 = scmp.lt.s32.totalorder %s3164_s9, 3  ;;  %s3166_s12 = smov [#allocation8]  }
  0x11   : > { %s244_s13 = sshll.u32 %s3166_s12, 4  ;;  %s3167_s15 = smov [#allocation9]   ;;  %s245_s13 = int_to_ptr.vmem [resolvable:$true] %s244_s13 }
  0x12   : > { %p3275_p3 = pnand %p2154_p0, %p232_p2  ;;  %s257_s16 = sshll.u32 %s3167_s15, 4  ;;  %s3287_s16 = int_to_ptr.vmem [resolvable:$true] %s257_s16 }
  0x13   : > { %s4161_s2 = sld [smem:[#allocation47_spill]] }
  0x14   : > { %s4158_s11 = scalar_select %p3275_p3, 1, 0 }
  0x15   : > { %p2468_p4 = pneg %p3275_p3 }
  0x16   : > { %4159 = sst [smem:[#allocation23_spill]] %s4158_s11 }
  0x17   : > { %p3283_p5 = pnand %p2468_p4, %p4098_p1 }
  0x19   : > { %s2844_s19 = scalar_lea.hbm %s4161_s2, 4096  ;;  %p3297_p7 = pneg %p3283_p5 }
  0x1a   : > { %p2845_p6 = scmp.ne.s32.totalorder %s4161_s2, %s2844_s19  ;;  %p2851_p10 = scmp.lt.u32.totalorder %s2844_s19, %s4161_s2 }
  0x1c   : > { %p2847_p8 = pnand %p3297_p7, %p2845_p6 }
  0x1e   : > { %p2848_p9 = pneg %p2847_p8 }
  0x20   : > { %p2853_p11 = pnand %p2851_p10, %p2848_p9 }
  0x22   : > { %2856 = shalt.err (!%p2853_p11)
}
  0x23   : > { %s2857_s15 = scalar_lea.vmem %s245_s13, 4096  ;;  %p2865_p2 = scmp.lt.s32.totalorder %s245_s13, %s245_s13 }
  0x24   : > { %p2858_p12 = scmp.ne.s32.totalorder %s245_s13, %s2857_s15  ;;  %p2866_p4 = scmp.lt.s32.totalorder %s2857_s15, %s2857_s15 }
  0x26   : > { %p2860_p13 = pnand %p2858_p12, %p3297_p7  ;;  %p2867_p1 = por %p2866_p4, %p2865_p2 }
  0x28   : > { %p2861_p0 = pneg %p2860_p13 }
  0x2a   : > { %p2868_p3 = pnand %p2867_p1, %p2861_p0 }
  0x2c   : > { %2871 = shalt.err (!%p2868_p3)
}
  0x2d   : > { %s4102_s17 = smov 256   ;;  %s4104_s18 = smov 16  }
  0x2e   : > { %2471 = dma.hbm_to_vmem [thread:$0]  (!%p3283_p5), %s4161_s2, 4096, %s245_s13, [#allocation7], %s4102_s17, %s4102_s17, %s4104_s18  }
  0x2f   : > { %s2872_s12 = scalar_lea.hbm %s4093_s3, 4096 }
  0x30   : > { %p2873_p1 = scmp.ne.s32.totalorder %s4093_s3, %s2872_s12  ;;  %p2879_p8 = scmp.lt.u32.totalorder %s2872_s12, %s4093_s3 }
  0x32   : > { %p2875_p3 = pnand %p2873_p1, %p3297_p7 }
  0x34   : > { %p2876_p6 = pneg %p2875_p3 }
  0x36   : > { %p2881_p9 = pnand %p2879_p8, %p2876_p6 }
  0x38   : > { %2884 = shalt.err (!%p2881_p9)
}
  0x39   : > { %s2885_s13 = scalar_lea.vmem %s3287_s16, 4096  ;;  %p2893_p13 = scmp.lt.s32.totalorder %s3287_s16, %s3287_s16 }
  0x3a   : > { %p2886_p10 = scmp.ne.s32.totalorder %s3287_s16, %s2885_s13  ;;  %p2894_p0 = scmp.lt.s32.totalorder %s2885_s13, %s2885_s13 }
  0x3c   : > { %p2888_p11 = pnand %p2886_p10, %p3297_p7  ;;  %p2895_p2 = por %p2894_p0, %p2893_p13 }
  0x3e   : > { %p2889_p12 = pneg %p2888_p11 }
  0x40   : > { %p2896_p4 = pnand %p2895_p2, %p2889_p12 }
  0x42   : > { %2899 = shalt.err (!%p2896_p4)
}
  0x43   : > { %2474 = dma.hbm_to_vmem [thread:$0]  (!%p3283_p5), %s4093_s3, 4096, %s3287_s16, [#allocation10], %s4102_s17, %s4102_s17, %s4104_s18  }
  0x44   : > { %s3170_s11 = smov [#allocation12]   ;;  %s3171_s20 = smov [#allocation11]  }
  0x45   : > { %s283_s19 = sshll.u32 %s3170_s11, 4  ;;  %s270_s21 = sshll.u32 %s3171_s20, 4  ;;  %s284_s19 = int_to_ptr.vmem [resolvable:$true] %s283_s19  ;;  %s3342_s21 = int_to_ptr.vmem [resolvable:$true] %s270_s21 }
  0x46   : > { %s2900_s15 = scalar_lea.hbm %s4095_s5, 2048 }
  0x47   : > { %p2901_p1 = scmp.ne.s32.totalorder %s4095_s5, %s2900_s15  ;;  %p2907_p8 = scmp.lt.u32.totalorder %s2900_s15, %s4095_s5 }
  0x49   : > { %p2903_p3 = pnand %p2901_p1, %p3297_p7 }
  0x4b   : > { %p2904_p6 = pneg %p2903_p3 }
  0x4d   : > { %p2909_p9 = pnand %p2907_p8, %p2904_p6 }
  0x4f   : > { %2912 = shalt.err (!%p2909_p9)
}
  0x50   : > { %s2913_s30 = scalar_lea.vmem %s284_s19, 2048  ;;  %p2921_p13 = scmp.lt.s32.totalorder %s284_s19, %s284_s19 }
  0x51   : > { %p2914_p10 = scmp.ne.s32.totalorder %s284_s19, %s2913_s30  ;;  %p2922_p0 = scmp.lt.s32.totalorder %s2913_s30, %s2913_s30 }
  0x53   : > { %p2916_p11 = pnand %p2914_p10, %p3297_p7  ;;  %p2923_p2 = por %p2922_p0, %p2921_p13 }
  0x55   : > { %p2917_p12 = pneg %p2916_p11 }
  0x57   : > { %p2924_p4 = pnand %p2923_p2, %p2917_p12 }
  0x59   : > { %2927 = shalt.err (!%p2924_p4)
}
  0x5a   : > { %s3172_s2 = smov 128   ;;  %s3173_s11 = smov 8  }
  0x5b   : > { %2480 = dma.hbm_to_vmem [thread:$0]  (!%p3283_p5), %s4095_s5, 2048, %s284_s19, [#allocation13], %s3172_s2, %s3172_s2, %s3173_s11  }
  0x5c   : > { %s2928_s13 = scalar_lea.hbm %s4094_s4, 2048 }
  0x5d   : > { %p2929_p1 = scmp.ne.s32.totalorder %s4094_s4, %s2928_s13  ;;  %p2935_p8 = scmp.lt.u32.totalorder %s2928_s13, %s4094_s4 }
  0x5f   : > { %p2931_p3 = pnand %p2929_p1, %p3297_p7 }
  0x61   : > { %p2932_p6 = pneg %p2931_p3 }
  0x63   : > { %p2937_p9 = pnand %p2935_p8, %p2932_p6 }
  0x65   : > { %2940 = shalt.err (!%p2937_p9)
}
  0x66   : > { %s2941_s19 = scalar_lea.vmem %s3342_s21, 2048  ;;  %p2949_p13 = scmp.lt.s32.totalorder %s3342_s21, %s3342_s21 }
  0x67   : > { %p2942_p10 = scmp.ne.s32.totalorder %s3342_s21, %s2941_s19  ;;  %p2950_p0 = scmp.lt.s32.totalorder %s2941_s19, %s2941_s19 }
  0x69   : > { %p2944_p11 = pnand %p2942_p10, %p3297_p7  ;;  %p2951_p2 = por %p2950_p0, %p2949_p13 }
  0x6b   : > { %p2945_p12 = pneg %p2944_p11 }
  0x6d   : > { %p2952_p4 = pnand %p2951_p2, %p2945_p12 }
  0x6f   : > { %2955 = shalt.err (!%p2952_p4)
}
  0x70   : > { %2477 = dma.hbm_to_vmem [thread:$0]  (!%p3283_p5), %s4094_s4, 2048, %s3342_s21, [#allocation10], %s3172_s2, %s3172_s2, %s3173_s11  }
  0x71   : > { %s3174_s23 = smov [#allocation14]   ;;  %s2956_s7 = scalar_lea.hbm %s4096_s6, 16 }
  0x72   : > { %s297_s12 = sshll.u32 %s3174_s23, 4  ;;  %p2957_p1 = scmp.ne.s32.totalorder %s4096_s6, %s2956_s7  ;;  %s298_s12 = int_to_ptr.vmem [resolvable:$true] %s297_s12 }
  0x73   : > { %p2963_p8 = scmp.lt.u32.totalorder %s2956_s7, %s4096_s6 }
  0x74   : > { %p2959_p3 = pnand %p2957_p1, %p3297_p7 }
  0x76   : > { %p2960_p6 = pneg %p2959_p3 }
  0x78   : > { %p2965_p9 = pnand %p2963_p8, %p2960_p6 }
  0x7a   : > { %2968 = shalt.err (!%p2965_p9)
}
  0x7b   : > { %s2969_s21 = scalar_lea.vmem %s298_s12, 16  ;;  %s2976_s2 = scalar_lea.vmem %s298_s12, 32 }
  0x7c   : > { %p2970_p10 = scmp.ne.s32.totalorder %s298_s12, %s2969_s21  ;;  %p2977_p13 = scmp.lt.s32.totalorder %s298_s12, %s298_s12 }
  0x7d   : > { %p2978_p0 = scmp.lt.s32.totalorder %s2976_s2, %s2969_s21 }
  0x7e   : > { %p2972_p11 = pnand %p2970_p10, %p3297_p7 }
  0x7f   : > { %p2979_p2 = por %p2978_p0, %p2977_p13 }
  0x80   : > { %p2973_p12 = pneg %p2972_p11 }
  0x82   : > { %p2980_p4 = pnand %p2979_p2, %p2973_p12 }
  0x84   : > { %2983 = shalt.err (!%p2980_p4)
}
  0x85   : > { %2483 = dma.hbm_to_vmem [thread:$0]  (!%p3283_p5), %s4096_s6, 16, %s298_s12, [#allocation13]  }
  0x86   : > { %s35_s22 = sadd.s32 1, %s3160_s8  ;;  %s47_s14 = sadd.s32 1, %s3152_s29 }
  0x87   : > { %p36_p7 = scmp.ge.s32.totalorder %s35_s22, 2  ;;  %p54_p1 = scmp.ne.s32.totalorder %s3152_s29, %s3148_s28 }
  0x88   : > { %p4107_p3 = scmp.eq.s32.totalorder %s3164_s9, 0  ;;  %p60_p8 = scmp.ne.s32.totalorder %s3148_s28, %s3144_s27 }
  0x89   : > { %s4257_s22 = smov (%p36_p7, %s35_s22), 0  ;;  %p4106_p9 = scmp.lt.s32.totalorder %s3164_s9, 2 }
  0x8a   : > { %p3412_p6 = por %p4107_p3, %p54_p1  ;;  %s42_s20 = ssub.s32 %s3160_s8, %s4257_s22 }
  0x8b   : > { %p45_p10 = scmp.eq.s32.totalorder %s42_s20, 0  ;;  %p4164_p5 = scmp.eq.s32.totalorder %s3270_s10, 0 }
  0x8c   : > { %s308_s12 = sand.u32 1, %s3152_s29   ;;  %s2285_s15 = sshll.u32 %s3160_s8, 10 }
  0x8d   : > { %p3423_p11 = por %p4164_p5, %p60_p8  ;;  %s2161_s7 = sshll.u32 %s308_s12, 6 }
  0x8e   : > { %s3430_s13 = scalar_select %p45_p10, %s3152_s29, %s47_s14  }
  0x8f   : > { %s3435_s19 = scalar_lea.hbm %s4090_s0, %s2285_s15  ;;  %s312_s27 = scalar_lea.vmem [#allocation3], %s2161_s7 }
  0x90   : > { %s322_s21 = sshll.u32 %s312_s27, 4  ;;  %p3441_p12 = pnand %p4106_p9, %p3412_p6  ;;  %s3445_s21 = int_to_ptr.vmem [resolvable:$true] %s322_s21 }
  0x91   : > { %s3447_s11 = scalar_lea.sflag [#allocation4], %s308_s12  ;;  %s2984_s17 = scalar_lea.hbm %s3435_s19, 1024 }
  0x92   : > { %p2985_p13 = scmp.ne.s32.totalorder %s3435_s19, %s2984_s17  ;;  %p2986_p0 = pneg %p3441_p12 }
  0x93   : > { %s2989_s20 = scalar_lea.hbm %s4090_s0, 2048  ;;  %p2990_p7 = scmp.lt.u32.totalorder %s3435_s19, %s4090_s0 }
  0x94   : > { %p2987_p2 = pnand %p2986_p0, %p2985_p13  ;;  %p2991_p1 = scmp.lt.u32.totalorder %s2989_s20, %s2984_s17 }
  0x95   : > { %p2993_p8 = scmp.lt.u32.totalorder %s2984_s17, %s3435_s19 }
  0x96   : > { %p2988_p4 = pneg %p2987_p2  ;;  %p2992_p6 = por %p2991_p1, %p2990_p7 }
  0x98   : > { %p2994_p10 = por %p2993_p8, %p2992_p6 }
  0x9a   : > { %p2995_p5 = pnand %p2994_p10, %p2988_p4 }
  0x9c   : > { %2998 = shalt.err (!%p2995_p5)
}
  0x9d   : > { %s2999_s12 = scalar_lea.vmem %s3445_s21, 1024  ;;  %s3175_s16 = smov [#allocation3]  }
  0x9e   : > { %p3000_p13 = scmp.ne.s32.totalorder %s3445_s21, %s2999_s12  ;;  %s3004_s30 = sshll.u32 %s3175_s16, 4  ;;  %s3005_s30 = int_to_ptr.vmem [resolvable:$false] %s3004_s30 }
  0x9f   : > { %s3006_s27 = scalar_lea.vmem %s3005_s30, 2048  ;;  %p3007_p3 = scmp.lt.s32.totalorder %s3445_s21, %s3005_s30 }
  0xa0   : > { %p3002_p2 = pnand %p3000_p13, %p2986_p0  ;;  %p3008_p7 = scmp.lt.s32.totalorder %s3006_s27, %s2999_s12 }
  0xa2   : > { %p3003_p9 = pneg %p3002_p2  ;;  %p3009_p1 = por %p3008_p7, %p3007_p3 }
  0xa4   : > { %p3010_p6 = pnand %p3009_p1, %p3003_p9 }
  0xa6   : > { %3013 = shalt.err (!%p3010_p6)
}
  0xa7   : > { %s4167_s17 = smov 16   ;;  %s4168_s14 = smov 256  }
  0xa8   : > { %2487 = dma.hbm_to_vmem [thread:$0]  (!%p3441_p12), %s3435_s19, 1024, %s3445_s21, %s3447_s11, %s4168_s14, %s4168_s14, %s4167_s17  }
  0xa9   : > { %s70_s2 = ssub.s32 1, %s3160_s8  ;;  %s71_s18 = ssub.s32 1, %s4257_s22 }
  0xaa   : > { %s72_s20 = ssub.s32 %s70_s2, %s71_s18  ;;  %s77_s15 = sadd.s32 1, %s3140_s26 }
  0xab   : > { %p75_p3 = scmp.eq.s32.totalorder %s72_s20, 0  ;;  %p84_p9 = scmp.ne.s32.totalorder %s3140_s26, %s3136_s25 }
  0xac   : > { %p90_p0 = scmp.ne.s32.totalorder %s3136_s25, %s3132_s24  ;;  %s332_s7 = sand.u32 1, %s3164_s9  }
  0xad   : > { %s3487_s12 = scalar_select %p75_p3, %s3140_s26, %s77_s15  }
  0xae   : > { %p4169_p4 = scmp.eq.s32.totalorder %s3164_s9, 0  ;;  %p4170_p10 = scmp.eq.s32.totalorder %s3270_s10, 0 }
  0xaf   : > { %s334_s30 = sand.u32 1, %s3140_s26   ;;  %s2287_s21 = sshll.u32 %s70_s2, 10 }
  0xb0   : > { %p86_p8 = por %p84_p9, %p4169_p4  ;;  %p3493_p5 = por %p90_p0, %p4170_p10 }
  0xb1   : > { %s2165_s19 = sshll.u32 %s334_s30, 6  ;;  %s3501_s18 = scalar_lea.hbm %s4091_s1, %s2287_s21 }
  0xb2   : > { %s4171_s16 = scalar_select %p3493_p5, 1, 0 }
  0xb3   : > { %s336_s24 = scalar_lea.vmem [#allocation6], %s2165_s19  ;;  %p4172_p12 = scmp.lt.s32.totalorder %s3164_s9, 2 }
  0xb4   : > { %s347_s20 = sshll.u32 %s336_s24, 4  ;;  %s3511_s2 = scalar_lea.sflag [#allocation7], %s332_s7  ;;  %s3509_s20 = int_to_ptr.vmem [resolvable:$true] %s347_s20 }
  0xb5   : > { %p3505_p13 = pnand %p4172_p12, %p86_p8  ;;  %s3014_s30 = scalar_lea.hbm %s3501_s18, 1024 }
  0xb6   : > { %p3015_p2 = scmp.ne.s32.totalorder %s3501_s18, %s3014_s30  ;;  %s3019_s11 = scalar_lea.hbm %s4091_s1, 2048 }
  0xb7   : > { %p3016_p7 = pneg %p3505_p13  ;;  %p3020_p3 = scmp.lt.u32.totalorder %s3501_s18, %s4091_s1 }
  0xb8   : > { %p3021_p9 = scmp.lt.u32.totalorder %s3019_s11, %s3014_s30  ;;  %p3023_p4 = scmp.lt.u32.totalorder %s3014_s30, %s3501_s18 }
  0xb9   : > { %p3017_p1 = pnand %p3016_p7, %p3015_p2 }
  0xba   : > { %p3022_p0 = por %p3021_p9, %p3020_p3 }
  0xbb   : > { %p3018_p6 = pneg %p3017_p1 }
  0xbc   : > { %p3024_p8 = por %p3023_p4, %p3022_p0 }
  0xbe   : > { %p3025_p10 = pnand %p3024_p8, %p3018_p6 }
  0xc0   : > { %3028 = shalt.err (!%p3025_p10)
}
  0xc1   : > { %s3029_s7 = scalar_lea.vmem %s3509_s20, 1024  ;;  %s3176_s19 = smov [#allocation6]  }
  0xc2   : > { %p3030_p12 = scmp.ne.s32.totalorder %s3509_s20, %s3029_s7  ;;  %s3034_s21 = sshll.u32 %s3176_s19, 4  ;;  %s3035_s21 = int_to_ptr.vmem [resolvable:$false] %s3034_s21 }
  0xc3   : > { %s3036_s27 = scalar_lea.vmem %s3035_s21, 2048  ;;  %p3037_p5 = scmp.lt.s32.totalorder %s3509_s20, %s3035_s21 }
  0xc4   : > { %p3032_p2 = pnand %p3030_p12, %p3016_p7  ;;  %p3038_p3 = scmp.lt.s32.totalorder %s3036_s27, %s3029_s7 }
  0xc6   : > { %p3033_p1 = pneg %p3032_p2  ;;  %p3039_p9 = por %p3038_p3, %p3037_p5 }
  0xc8   : > { %p3040_p0 = pnand %p3039_p9, %p3033_p1 }
  0xca   : > { %3043 = shalt.err (!%p3040_p0)
}
  0xcb   : > { %2490 = dma.hbm_to_vmem [thread:$0]  (!%p3505_p13), %s3501_s18, 1024, %s3509_s20, %s3511_s2, %s4168_s14, %s4168_s14, %s4167_s17  }
  0xcc   : > { %s4174_s30 = sld [smem:[#allocation23_spill]] }
  0xd2   : > { %p4175_p7 = scmp.ne.s32.totalorder %s4174_s30, 0 }
  0xd4   : > { %359 = sbr.rel (%p4175_p7) target bundleno = 1938 (0x792), region = 48 }
  0xdb   : > { %s361_s11 = sand.u32 1, %s3148_s28  }
  0xdc   : > { %s2170_s24 = sshll.u32 %s361_s11, 6  ;;  %s362_s7 = scalar_lea.sflag [#allocation4], %s361_s11 }
  0xdd   : > { %s3545_s19 = scalar_lea.vmem [#allocation3], %s2170_s24 }
  0xde   : > { %3107 = dma.done.wait (%p3423_p11), %s362_s7, 1024  }
  0xdf   : > { %3109 = vsyncadd (%p3423_p11), %s362_s7, 4294966272  ;;  %s370_s15 = sand.u32 1, %s3270_s10   ;;  %s372_s17 = sand.u32 1, %s3136_s25  }
  0xe0   : > { %s2171_s14 = sshll.u32 %s372_s17, 6  ;;  %s371_s18 = scalar_lea.sflag [#allocation7], %s370_s15 }
  0xe1   : > { %s3553_s20 = scalar_lea.vmem [#allocation6], %s2171_s14  ;;  %p4176_p5 = scmp.ne.s32.totalorder %s4171_s16, 0 }
  0xe3   : > { %3111 = dma.done.wait (%p4176_p5), %s371_s18, 1024  }
  0xe4   : > { %3113 = vsyncadd (%p4176_p5), %s371_s18, 4294966272  ;;  %p4177_p13 = scmp.eq.s32.totalorder %s3270_s10, 0 }
  0xe6   : > { %3115 = dma.done.wait (%p4177_p13), [#allocation7], 4096   ;;  %p4178_p6 = pmov %p4177_p13 }
  0xe8   : > { %3117 = vsyncadd (%p4178_p6), [#allocation7], 4294963200  ;;  %p4179_p11 = pmov %p4178_p6 }
  0xe9   : > { %p4180_p4 = pmov %p4178_p6 }
  0xea   : > { %3119 = dma.done.wait (%p4179_p11), [#allocation10], 6144  }
  0xeb   : > { %3121 = vsyncadd (%p4180_p4), [#allocation10], 4294961152  ;;  %p4181_p8 = pmov %p4180_p4 }
  0xec   : > { %p4182_p10 = pmov %p4180_p4 }
  0xed   : > { %3123 = dma.done.wait (%p4181_p8), [#allocation13], 2064  }
  0xee   : > { %3125 = vsyncadd (%p4182_p10), [#allocation13], 4294965232  ;;  %s4183_s23 = sld [smem:[#allocation22_spill]] }
  0xf4   : > { %p2177_p12 = scmp.ne.s32.totalorder %s4183_s23, 0 }
  0xf5   : > { %v3177_v0 = vmov (!%p2177_p12), 0.0   ;;  %v3178_v1 = vmov (!%p2177_p12), -inf  }
  0xf6   : > { %432 = sbr.rel (%p2177_p12) target bundleno = 253 (0xfd), region = 80  ;;  %433 = vst [vmem:[#allocation2] sm:$0xff] (!%p2177_p12), %v3177_v0  ;;  %435 = vst [vmem:[#allocation2 + $0x8] sm:$0xff] (!%p2177_p12), %v3177_v0 }
  0xf7   : > { %439 = vst [vmem:[#allocation2 + $0x18] sm:$0xff] (!%p2177_p12), %v3177_v0  ;;  %441 = vst [vmem:[#allocation2 + $0x20] sm:$0xff] (!%p2177_p12), %v3177_v0 }
  0xf8   : > { %437 = vst [vmem:[#allocation2 + $0x10] sm:$0xff] (!%p2177_p12), %v3178_v1  ;;  %443 = vst [vmem:[#allocation2 + $0x28] sm:$0xff] (!%p2177_p12), %v3178_v1 }
  0xfd PF: > { %v3572_v2 = vld [vmem:[#allocation8 + $0x4] ss:$16 sps:$4 sm:$0xff]   ;;  %v3574_v3 = vld [vmem:[#allocation8] ss:$16 sps:$4 sm:$0xff]   ;;  %v4109_v4 = vmov 0   ;;  %s4245_s16 = sld [smem:[#allocation22_spill]] }
  0xfe   : > { %714 = vmatprep.mubr.bf16.mxu0 %v4109_v4  ;;  %755 = vmatprep.mubr.bf16.mxu1 %v4109_v4  ;;  %v3579_v5 = vld [vmem:[#allocation8 + $0x24] ss:$16 sps:$4 sm:$0xff]   ;;  %v3582_v6 = vld [vmem:[#allocation8 + $0x20] ss:$16 sps:$4 sm:$0xff]   ;;  %v3587_v8 = vld [vmem:[#allocation8 + $0xc] ss:$16 sps:$4 sm:$0xff]  }
  0xff   : > { %682 = vmatprep.subr.bf16.mxu0 %v3572_v2  ;;  %v3585_v7 = vld [vmem:[#allocation8 + $0x44] ss:$16 sps:$4 sm:$0xff]   ;;  %v3589_v9 = vld [vmem:[#allocation8 + $0x8] ss:$16 sps:$4 sm:$0xff]   ;;  %v3592_v10 = vld [vmem:[#allocation8 + $0x40] ss:$16 sps:$4 sm:$0xff]   ;;  %723 = vmatprep.subr.bf16.mxu1 %v3587_v8 }
 0x100   : > { %683 = vmatpush1.bf16.msra.mxu0 %v3574_v3  ;;  %v3596_v11 = vld [vmem:[#allocation8 + $0x64] ss:$16 sps:$4 sm:$0xff]   ;;  %724 = vmatpush1.bf16.msra.mxu1 %v3589_v9  ;;  %v3599_v12 = vld [vmem:[#allocation8 + $0x2c] ss:$16 sps:$4 sm:$0xff]   ;;  %v3601_v13 = vld [vmem:[#allocation8 + $0x28] ss:$16 sps:$4 sm:$0xff]  }
 0x101   : > { %684 = vmatprep.subr.bf16.mxu0 %v3579_v5  ;;  %725 = vmatprep.subr.bf16.mxu1 %v3599_v12  ;;  %v3605_v14 = vld [vmem:[#allocation8 + $0x60] ss:$16 sps:$4 sm:$0xff]   ;;  %v3607_v15 = vld [vmem:[#allocation8 + $0x84] ss:$16 sps:$4 sm:$0xff]   ;;  %v3609_v16 = vld [vmem:[#allocation8 + $0x4c] ss:$16 sps:$4 sm:$0xff]  }
 0x102   : > { %4184 = vst [vmem:[#allocation24_spill] sm:$0xff] %v3605_v14  ;;  %4185 = vst [vmem:[#allocation25_spill] sm:$0xff] %v3607_v15  ;;  %v3613_v17 = vld [vmem:[#allocation8 + $0x48] ss:$16 sps:$4 sm:$0xff]   ;;  %v3616_v18 = vld [vmem:[#allocation8 + $0x6c] ss:$16 sps:$4 sm:$0xff]  }
 0x103   : > { %v3619_v19 = vld [vmem:[#allocation8 + $0x80] ss:$16 sps:$4 sm:$0xff]   ;;  %v3622_v20 = vld [vmem:[#allocation8 + $0xa4] ss:$16 sps:$4 sm:$0xff]   ;;  %v3625_v21 = vld [vmem:[#allocation8 + $0x68] ss:$16 sps:$4 sm:$0xff]  }
 0x104   : > { %685 = vmatpush1.bf16.msra.mxu0 %v3582_v6  ;;  %726 = vmatpush1.bf16.msra.mxu1 %v3601_v13  ;;  %4186 = vst [vmem:[#allocation26_spill] sm:$0xff] %v3619_v19  ;;  %4187 = vst [vmem:[#allocation27_spill] sm:$0xff] %v3622_v20  ;;  %v3628_v22 = vld [vmem:[#allocation8 + $0x8c] ss:$16 sps:$4 sm:$0xff]   ;;  %v3631_v23 = vld [vmem:[#allocation8 + $0xa0] ss:$16 sps:$4 sm:$0xff]  }
 0x105   : > { %686 = vmatprep.subr.bf16.mxu0 %v3585_v7  ;;  %727 = vmatprep.subr.bf16.mxu1 %v3609_v16  ;;  %4188 = vst [vmem:[#allocation28_spill] sm:$0xff] %v3625_v21  ;;  %4189 = vst [vmem:[#allocation29_spill] sm:$0xff] %v3628_v22  ;;  %v3633_v24 = vld [vmem:[#allocation8 + $0xc4] ss:$16 sps:$4 sm:$0xff]   ;;  %v3637_v25 = vld [vmem:[#allocation8 + $0x88] ss:$16 sps:$4 sm:$0xff]  }
 0x106   : > { %4190 = vst [vmem:[#allocation30_spill] sm:$0xff] %v3631_v23  ;;  %4191 = vst [vmem:[#allocation31_spill] sm:$0xff] %v3633_v24  ;;  %v3640_v26 = vld [vmem:[#allocation8 + $0xac] ss:$16 sps:$4 sm:$0xff]   ;;  %v3642_v27 = vld [vmem:[#allocation8 + $0xc0] ss:$16 sps:$4 sm:$0xff]  }
 0x107   : > { %4192 = vst [vmem:[#allocation32_spill] sm:$0xff] %v3637_v25  ;;  %4193 = vst [vmem:[#allocation33_spill] sm:$0xff] %v3640_v26  ;;  %v3645_v28 = vld [vmem:[#allocation8 + $0xe4] ss:$16 sps:$4 sm:$0xff]   ;;  %v3649_v29 = vld [vmem:[#allocation8 + $0xa8] ss:$16 sps:$4 sm:$0xff]  }
 0x108   : > { %687 = vmatpush1.bf16.msra.mxu0 %v3592_v10  ;;  %728 = vmatpush1.bf16.msra.mxu1 %v3613_v17  ;;  %4194 = vst [vmem:[#allocation34_spill] sm:$0xff] %v3642_v27  ;;  %4195 = vst [vmem:[#allocation35_spill] sm:$0xff] %v3645_v28  ;;  %v3652_v30 = vld [vmem:[#allocation8 + $0xcc] ss:$16 sps:$4 sm:$0xff]   ;;  %v3654_v31 = vld [vmem:[#allocation8 + $0xe0] ss:$16 sps:$4 sm:$0xff]  }
 0x109   : > { %688 = vmatprep.subr.bf16.mxu0 %v3596_v11  ;;  %729 = vmatprep.subr.bf16.mxu1 %v3616_v18  ;;  %4196 = vst [vmem:[#allocation36_spill] sm:$0xff] %v3649_v29  ;;  %4197 = vst [vmem:[#allocation37_spill] sm:$0xff] %v3652_v30  ;;  %v508_v32 = vld [vmem:[#allocation2] sm:$0xff]  ;;  %v3661_v34 = vld [vmem:[#allocation8 + $0xc8] ss:$16 sps:$4 sm:$0xff]   ;;  %p2278_p2 = scmp.ne.s32.totalorder %s4245_s16, 1 }
 0x10a   : > { %4198 = vst [vmem:[#allocation38_spill] sm:$0xff] %v3654_v31  ;;  %v3657_v33 = vld [vmem:[#allocation9 + $0x4] ss:$16 sps:$4 sm:$0xff]   ;;  %4200 = vst [vmem:[#allocation40_spill] sm:$0xff] %v3661_v34  ;;  %v3664_v35 = vld [vmem:[#allocation8 + $0xec] ss:$16 sps:$4 sm:$0xff]   ;;  %v521_v36 = vpack.c.bf16 %v508_v32, %v508_v32 }
 0x10b   : > { %4199 = vst [vmem:[#allocation39_spill] sm:$0xff] %v3657_v33  ;;  %4201 = vst [vmem:[#allocation41_spill] sm:$0xff] %v3664_v35  ;;  %v3666_v37 = vld [vmem:[#allocation9] ss:$16 sps:$4 sm:$0xff]   ;;  %v3669_v38 = vld [vmem:[#allocation9 + $0x24] ss:$16 sps:$4 sm:$0xff]  }
 0x10c   : > { %689 = vmatpush1.bf16.msra.mxu0 %v3605_v14  ;;  %730 = vmatpush1.bf16.msra.mxu1 %v3625_v21  ;;  %v3673_v39 = vld [vmem:[#allocation8 + $0xe8] ss:$16 sps:$4 sm:$0xff]   ;;  %v3676_v40 = vld [vmem:[#allocation9 + $0xc] ss:$16 sps:$4 sm:$0xff]   ;;  %v3679_v41 = vld [vmem:[#allocation9 + $0x20] ss:$16 sps:$4 sm:$0xff]  }
 0x10d   : > { %690 = vmatprep.subr.bf16.mxu0 %v3607_v15  ;;  %731 = vmatprep.subr.bf16.mxu1 %v3628_v22  ;;  %4202 = vst [vmem:[#allocation42_spill] sm:$0xff] %v3673_v39  ;;  %4203 = vst [vmem:[#allocation43_spill] sm:$0xff] %v3676_v40  ;;  %v3681_v42 = vld [vmem:[#allocation9 + $0x44] ss:$16 sps:$4 sm:$0xff]   ;;  %v3686_v43 = vld [vmem:[#allocation9 + $0x8] ss:$16 sps:$4 sm:$0xff]  }
 0x10e   : > { %v3689_v44 = vld [vmem:[#allocation9 + $0x2c] ss:$16 sps:$4 sm:$0xff]   ;;  %v3692_v45 = vld [vmem:[#allocation9 + $0x40] ss:$16 sps:$4 sm:$0xff]   ;;  %v3695_v46 = vld [vmem:[#allocation9 + $0x64] ss:$16 sps:$4 sm:$0xff]  }
 0x10f   : > { %v3698_v47 = vld [vmem:[#allocation9 + $0x28] ss:$16 sps:$4 sm:$0xff]   ;;  %v3701_v48 = vld [vmem:[#allocation9 + $0x4c] ss:$16 sps:$4 sm:$0xff]   ;;  %v3705_v49 = vld [vmem:[#allocation9 + $0x60] ss:$16 sps:$4 sm:$0xff]  }
 0x110   : > { %691 = vmatpush1.bf16.msra.mxu0 %v3619_v19  ;;  %732 = vmatpush1.bf16.msra.mxu1 %v3637_v25  ;;  %v3708_v50 = vld [vmem:[#allocation9 + $0x84] ss:$16 sps:$4 sm:$0xff]   ;;  %v3711_v51 = vld [vmem:[#allocation9 + $0x48] ss:$16 sps:$4 sm:$0xff]   ;;  %v3714_v52 = vld [vmem:[#allocation9 + $0x6c] ss:$16 sps:$4 sm:$0xff]  }
 0x111   : > { %692 = vmatprep.subr.bf16.mxu0 %v3622_v20  ;;  %733 = vmatprep.subr.bf16.mxu1 %v3640_v26  ;;  %v3717_v53 = vld [vmem:[#allocation9 + $0x80] ss:$16 sps:$4 sm:$0xff]   ;;  %v3720_v54 = vld [vmem:[#allocation9 + $0xa4] ss:$16 sps:$4 sm:$0xff]   ;;  %v3723_v55 = vld [vmem:[#allocation9 + $0x68] ss:$16 sps:$4 sm:$0xff]  }
 0x112   : > { %v3726_v56 = vld [vmem:[#allocation9 + $0x8c] ss:$16 sps:$4 sm:$0xff]   ;;  %v3729_v57 = vld [vmem:[#allocation9 + $0xa0] ss:$16 sps:$4 sm:$0xff]   ;;  %v3732_v58 = vld [vmem:[#allocation9 + $0xc4] ss:$16 sps:$4 sm:$0xff]  }
 0x113   : > { %4204 = vst [vmem:[#allocation44_spill] sm:$0xff] %v3729_v57  ;;  %4205 = vst [vmem:[#allocation45_spill] sm:$0xff] %v3732_v58  ;;  %v3735_v59 = vld [vmem:[#allocation9 + $0x88] ss:$16 sps:$4 sm:$0xff]   ;;  %v3738_v60 = vld [vmem:[#allocation9 + $0xac] ss:$16 sps:$4 sm:$0xff]  }
 0x114   : > { %693 = vmatpush1.bf16.msra.mxu0 %v3631_v23  ;;  %734 = vmatpush1.bf16.msra.mxu1 %v3649_v29  ;;  %v3741_v61 = vld [vmem:[#allocation9 + $0xc0] ss:$16 sps:$4 sm:$0xff]   ;;  %v3744_v62 = vld [vmem:[#allocation9 + $0xe4] ss:$16 sps:$4 sm:$0xff]   ;;  %v3747_v63 = vld [vmem:[#allocation9 + $0xa8] ss:$16 sps:$4 sm:$0xff]  }
 0x115   : > { %694 = vmatprep.subr.bf16.mxu0 %v3633_v24  ;;  %735 = vmatprep.subr.bf16.mxu1 %v3652_v30  ;;  %4206 = vst [vmem:[#allocation46_spill] sm:$0xff] %v3744_v62  ;;  %v3750_v0 = vld [vmem:[#allocation9 + $0xcc] ss:$16 sps:$4 sm:$0xff]   ;;  %v3753_v1 = vld [vmem:[#allocation9 + $0xe0] ss:$16 sps:$4 sm:$0xff]   ;;  %vm3181_vm0 = vmmov (!%p2278_p2), 0  }
 0x116   : > { %v512_v32 = vld [vmem:[#allocation2 + $0x18] sm:$0xff]  ;;  %vm1993_vm1 = vcmask (!%p2278_p2), 39936  }
 0x118   : > { %695 = vmatpush1.bf16.msra.mxu0 %v3642_v27  ;;  %736 = vmatpush1.bf16.msra.mxu1 %v3661_v34 }
 0x119   : > { %696 = vmatprep.subr.bf16.mxu0 %v3645_v28  ;;  %737 = vmatprep.subr.bf16.mxu1 %v3664_v35 }
 0x11c   : > { %697 = vmatpush1.bf16.msra.mxu0 %v3654_v31  ;;  %738 = vmatpush1.bf16.msra.mxu1 %v3673_v39 }
 0x11d   : > { %960 = vmatprep.subr.bf16.mxu0 %v3657_v33  ;;  %1001 = vmatprep.subr.bf16.mxu1 %v3676_v40 }
 0x11f   : > { %715 = vmatmul.mubr.bf16.vlgmr.msra.gmra.mrb[0].mxu0 %v521_v36  ;;  %756 = vmatmul.mubr.bf16.vlgmr.msra.gmra.mrb[0].mxu1 %v521_v36  ;;  %v3757_v36 = vld [vmem:[#allocation9 + $0xc8] ss:$16 sps:$4 sm:$0xff]  }
 0x120   : > { %961 = vmatpush1.bf16.msra.mxu0 %v3666_v37  ;;  %992 = vmatprep.mubr.bf16.mxu0 %v4109_v4 }
 0x121   : > { %962 = vmatprep.subr.bf16.mxu0 %v3669_v38  ;;  %1002 = vmatpush1.bf16.msra.mxu1 %v3686_v43 }
 0x122   : > { %1003 = vmatprep.subr.bf16.mxu1 %v3689_v44  ;;  %1033 = vmatprep.mubr.bf16.mxu1 %v4109_v4  ;;  %v3760_v4 = vld [vmem:[#allocation9 + $0xec] ss:$16 sps:$4 sm:$0xff]  }
 0x124   : > { %963 = vmatpush1.bf16.msra.mxu0 %v3679_v41 }
 0x125   : > { %964 = vmatprep.subr.bf16.mxu0 %v3681_v42  ;;  %1004 = vmatpush1.bf16.msra.mxu1 %v3698_v47 }
 0x126   : > { %1005 = vmatprep.subr.bf16.mxu1 %v3701_v48 }
 0x128   : > { %965 = vmatpush1.bf16.msra.mxu0 %v3692_v45 }
 0x129   : > { %966 = vmatprep.subr.bf16.mxu0 %v3695_v46  ;;  %1006 = vmatpush1.bf16.msra.mxu1 %v3711_v51 }
 0x12a   : > { %1007 = vmatprep.subr.bf16.mxu1 %v3714_v52 }
 0x12c   : > { %967 = vmatpush1.bf16.msra.mxu0 %v3705_v49 }
 0x12d   : > { %968 = vmatprep.subr.bf16.mxu0 %v3708_v50  ;;  %1008 = vmatpush1.bf16.msra.mxu1 %v3723_v55 }
 0x12e   : > { %1009 = vmatprep.subr.bf16.mxu1 %v3726_v56 }
 0x130   : > { %969 = vmatpush1.bf16.msra.mxu0 %v3717_v53 }
 0x131   : > { %970 = vmatprep.subr.bf16.mxu0 %v3720_v54  ;;  %1010 = vmatpush1.bf16.msra.mxu1 %v3735_v59 }
 0x132   : > { %1011 = vmatprep.subr.bf16.mxu1 %v3738_v60 }
 0x134   : > { %971 = vmatpush1.bf16.msra.mxu0 %v3729_v57  ;;  %v3764_v57 = vld [vmem:[#allocation9 + $0xe8] ss:$16 sps:$4 sm:$0xff]  }
 0x135   : > { %972 = vmatprep.subr.bf16.mxu0 %v3732_v58  ;;  %1012 = vmatpush1.bf16.msra.mxu1 %v3747_v63  ;;  %v799_v58 = vpack.c.bf16 %v512_v32, %v512_v32 }
 0x136   : > { %1013 = vmatprep.subr.bf16.mxu1 %v3750_v0 }
 0x138   : > { %973 = vmatpush1.bf16.msra.mxu0 %v3741_v61 }
 0x139   : > { %974 = vmatprep.subr.bf16.mxu0 %v3744_v62  ;;  %1014 = vmatpush1.bf16.msra.mxu1 %v3757_v36  ;;  %v4207_v62 = vmov 0  }
 0x13a   : > { %1015 = vmatprep.subr.bf16.mxu1 %v3760_v4 }
 0x13c   : > { %975 = vmatpush1.bf16.msra.mxu0 %v3753_v1 }
 0x13d   : > { %1086 = vmatprep.subr.bf16.mxu0 %v3572_v2  ;;  %1016 = vmatpush1.bf16.msra.mxu1 %v3764_v57 }
 0x13e   : > { %1127 = vmatprep.subr.bf16.mxu1 %v3587_v8 }
 0x13f   : > { %993 = vmatmul.mubr.bf16.vlgmr.msra.gmra.mrb[4].mxu0 %v799_v58 }
 0x140   : > { %1087 = vmatpush1.bf16.msra.mxu0 %v3574_v3  ;;  %1118 = vmatprep.mubr.bf16.mxu0 %v4207_v62 }
 0x141   : > { %1088 = vmatprep.subr.bf16.mxu0 %v3579_v5  ;;  %1034 = vmatmul.mubr.bf16.vlgmr.msra.gmra.mrb[4].mxu1 %v799_v58  ;;  %v515_v58 = vld [vmem:[%s3545_s19] sm:$0xff] }
 0x142   : > { %1128 = vmatpush1.bf16.msra.mxu1 %v3589_v9  ;;  %1159 = vmatprep.mubr.bf16.mxu1 %v4207_v62  ;;  %v517_v32 = vunpack.c.l.bf16 %v515_v58 }
 0x143   : > { %1129 = vmatprep.subr.bf16.mxu1 %v3599_v12 }
 0x144   : > { %1089 = vmatpush1.bf16.msra.mxu0 %v3582_v6 }
 0x145   : > { %1090 = vmatprep.subr.bf16.mxu0 %v3585_v7 }
 0x146   : > { %1130 = vmatpush1.bf16.msra.mxu1 %v3601_v13 }
 0x147   : > { %1131 = vmatprep.subr.bf16.mxu1 %v3609_v16 }
 0x148   : > { %1091 = vmatpush1.bf16.msra.mxu0 %v3592_v10 }
 0x149   : > { %1092 = vmatprep.subr.bf16.mxu0 %v3596_v11 }
 0x14a   : > { %1132 = vmatpush1.bf16.msra.mxu1 %v3613_v17 }
 0x14b   : > { %1133 = vmatprep.subr.bf16.mxu1 %v3616_v18 }
 0x14c   : > { %1093 = vmatpush1.bf16.msra.mxu0 %v3605_v14 }
 0x14d   : > { %1094 = vmatprep.subr.bf16.mxu0 %v3607_v15 }
 0x14e   : > { %1134 = vmatpush1.bf16.msra.mxu1 %v3625_v21 }
 0x14f   : > { %1135 = vmatprep.subr.bf16.mxu1 %v3628_v22 }
 0x150   : > { %1095 = vmatpush1.bf16.msra.mxu0 %v3619_v19 }
 0x151   : > { %1096 = vmatprep.subr.bf16.mxu0 %v3622_v20 }
 0x152   : > { %1136 = vmatpush1.bf16.msra.mxu1 %v3637_v25 }
 0x153   : > { %1137 = vmatprep.subr.bf16.mxu1 %v3640_v26 }
 0x154   : > { %1097 = vmatpush1.bf16.msra.mxu0 %v3631_v23 }
 0x155   : > { %1098 = vmatprep.subr.bf16.mxu0 %v3633_v24 }
 0x156   : > { %1138 = vmatpush1.bf16.msra.mxu1 %v3649_v29  ;;  %v516_v29 = vld [vmem:[%s3545_s19 + $0x8] sm:$0xff] }
 0x157   : > { %1139 = vmatprep.subr.bf16.mxu1 %v3652_v30  ;;  %v520_v19 = vunpack.c.h.bf16 %v516_v29 }
 0x158   : > { %1099 = vmatpush1.bf16.msra.mxu0 %v3642_v27  ;;  %v518_v27 = vunpack.c.h.bf16 %v515_v58 }
 0x159   : > { %1100 = vmatprep.subr.bf16.mxu0 %v3645_v28 }
 0x15a   : > { %1140 = vmatpush1.bf16.msra.mxu1 %v3661_v34  ;;  %v519_v34 = vunpack.c.l.bf16 %v516_v29 }
 0x15b   : > { %1141 = vmatprep.subr.bf16.mxu1 %v3664_v35 }
 0x15c   : > { %1101 = vmatpush1.bf16.msra.mxu0 %v3654_v31 }
 0x15d   : > { %1204 = vmatprep.subr.bf16.mxu0 %v3657_v33 }
 0x15e   : > { %1142 = vmatpush1.bf16.msra.mxu1 %v3673_v39 }
 0x15f   : > { %1245 = vmatprep.subr.bf16.mxu1 %v3676_v40 }
 0x1f2   : > { %v716_v24 = vpop.f32.mrb[0].mxu0  ;;  %v757_v33 = vpop.f32.mrb[0].mxu1 }
 0x1f3   : > { %v764_v28 = vadd.f32 %v716_v24, %v517_v32  ;;  %v718_v23 = vpop.f32.mrb[1].mxu0  ;;  %v759_v35 = vpop.f32.mrb[1].mxu1  ;;  %v766_v39 = vadd.f32 %v757_v33, %v519_v34 }
 0x1f4   : > { %v765_v30 = vadd.f32 %v718_v23, %v518_v27  ;;  %v720_v26 = vpop.f32.mrb[2].mxu0  ;;  %v761_v40 = vpop.f32.mrb[2].mxu1  ;;  %v767_v15 = vadd.f32 %v759_v35, %v520_v19 }
 0x1f5   : > { %v2210_v31 = vmul.f32 -1.442695, %v764_v28  ;;  %v721_v20 = vpop.f32.mrb[3].mxu0  ;;  %v762_v22 = vpop.f32.mrb[3].mxu1  ;;  %v2212_v58 = vmul.f32 -1.442695, %v766_v39 }
 0x1f6   : > { %v2211_v25 = vmul.f32 -1.442695, %v765_v30  ;;  %v510_v28 = vld [vmem:[#allocation2 + $0x8] sm:$0xff] }
 0x1f7   : > { %2688 = vpow2.f32 %v2210_v31 }
 0x1f8   : > { %2690 = vpow2.f32 %v2211_v25  ;;  %v2213_v25 = vld [vmem:[%s3553_s20 + $0x30] sm:$0xff] }
 0x1f9   : > { %2692 = vpow2.f32 %v2212_v58  ;;  %v795_v22 = vunpack.c.l.bf16 %v2213_v25  ;;  %v796_v19 = vunpack.c.h.bf16 %v2213_v25 }
 0x1fa   : > { %2694 = vtanh.f32 %v767_v15  ;;  %v2214_v15 = vld [vmem:[%s3553_s20 + $0x38] sm:$0xff] }
 0x201   : > { %v2689_v21 = vpop.eup %2688 }
 0x202   : > { %v2691_v24 = vpop.eup %2690  ;;  %v777_v23 = vadd.f32 1.0, %v2689_v21 }
 0x203   : > { %v778_v26 = vadd.f32 1.0, %v2691_v24  ;;  %v2693_v20 = vpop.eup %2692 }
 0x204   : > { %2696 = vrcp.f32 %v777_v23  ;;  %v2695_v27 = vpop.eup %2694  ;;  %v779_v31 = vadd.f32 1.0, %v2693_v20 }
 0x205   : > { %2698 = vrcp.f32 %v778_v26  ;;  %v797_v26 = vunpack.c.l.bf16 %v2214_v15 }
 0x206   : > { %2700 = vrcp.f32 %v779_v31  ;;  %v798_v31 = vunpack.c.h.bf16 %v2214_v15 }
 0x20e   : > { %v2697_v30 = vpop.eup %2696 }
 0x20f   : > { %v2699_v33 = vpop.eup %2698  ;;  %v788_v29 = vmul.f32 %v2697_v30, %v2695_v27 }
 0x210   : > { %v787_v34 = vmul.f32 %v2699_v33, %v510_v28 }
 0x212   : > { %v3807_v35 = vadd.f32 %v788_v29, %v787_v34  ;;  %v994_v21 = vpop.f32.mrb[4].mxu0  ;;  %v2701_v29 = vpop.eup %2700 }
 0x213   : > { %v1042_v39 = vadd.f32 %v994_v21, %v795_v22  ;;  %v996_v40 = vpop.f32.mrb[5].mxu0 }
 0x214   : > { %2702 = vtanh.f32 %v3807_v35  ;;  %v1043_v32 = vadd.f32 %v996_v40, %v796_v19  ;;  %v998_v58 = vpop.f32.mrb[6].mxu0  ;;  %v1035_v27 = vpop.f32.mrb[4].mxu1 }
 0x215   : > { %v2247_v24 = vmul.f32 -1.442695, %v1042_v39  ;;  %v999_v23 = vpop.f32.mrb[7].mxu0  ;;  %v1037_v28 = vpop.f32.mrb[5].mxu1  ;;  %v1044_v25 = vadd.f32 %v1035_v27, %v797_v26 }
 0x216   : > { %v2248_v20 = vmul.f32 -1.442695, %v1043_v32  ;;  %v1039_v30 = vpop.f32.mrb[6].mxu1  ;;  %v1045_v21 = vadd.f32 %v1037_v28, %v798_v31  ;;  %v514_v23 = vld [vmem:[#allocation2 + $0x20] sm:$0xff] }
 0x217   : > { %2704 = vpow2.f32 %v2247_v24  ;;  %v1040_v33 = vpop.f32.mrb[7].mxu1  ;;  %v2249_v34 = vmul.f32 -1.442695, %v1044_v25  ;;  %v4208_v31 = vld [vmem:[#allocation44_spill] sm:$0xff] }
 0x218   : > { %2706 = vpow2.f32 %v2248_v20  ;;  %v4209_v33 = vld [vmem:[#allocation45_spill] sm:$0xff] }
 0x219   : > { %2708 = vpow2.f32 %v2249_v34  ;;  %v4210_v34 = vld [vmem:[#allocation46_spill] sm:$0xff] }
 0x21a   : > { %2710 = vtanh.f32 %v1045_v21 }
 0x21e   : > { %v2703_v22 = vpop.eup %2702 }
 0x21f   : > { %v3811_v14 = vmul.f32 %v2703_v22, %v2701_v29 }
 0x221   : > { %v2705_v19 = vpop.eup %2704  ;;  %v1085_v39 = vpack.c.bf16 %v3811_v14, %v3811_v14 }
 0x222   : > { %v2707_v40 = vpop.eup %2706  ;;  %v1055_v32 = vadd.f32 1.0, %v2705_v19 }
 0x223   : > { %v1056_v58 = vadd.f32 1.0, %v2707_v40  ;;  %1119 = vmatmul.mubr.bf16.vlgmr.msra.gmra.mrb[8].mxu0 %v1085_v39  ;;  %1160 = vmatmul.mubr.bf16.vlgmr.msra.gmra.mrb[8].mxu1 %v1085_v39  ;;  %v2709_v15 = vpop.eup %2708  ;;  %v4221_v39 = vld [vmem:[#allocation31_spill] sm:$0xff]  ;;  %v4222_v40 = vld [vmem:[#allocation37_spill] sm:$0xff] }
 0x224   : > { %2712 = vrcp.f32 %v1055_v32  ;;  %1205 = vmatpush1.bf16.msra.mxu0 %v3666_v37  ;;  %1246 = vmatpush1.bf16.msra.mxu1 %v3686_v43  ;;  %v2711_v24 = vpop.eup %2710  ;;  %v1057_v20 = vadd.f32 1.0, %v2709_v15  ;;  %v4223_v32 = vld [vmem:[#allocation34_spill] sm:$0xff]  ;;  %v4225_v15 = vld [vmem:[#allocation35_spill] sm:$0xff] }
 0x225   : > { %2714 = vrcp.f32 %v1056_v58  ;;  %1206 = vmatprep.subr.bf16.mxu0 %v3669_v38  ;;  %1247 = vmatprep.subr.bf16.mxu1 %v3689_v44  ;;  %v4224_v58 = vld [vmem:[#allocation40_spill] sm:$0xff] }
 0x226   : > { %1236 = vmatprep.mubr.bf16.mxu0 %v4207_v62  ;;  %1277 = vmatprep.mubr.bf16.mxu1 %v4207_v62  ;;  %2716 = vrcp.f32 %v1057_v20  ;;  %v4229_v20 = vld [vmem:[#allocation39_spill] sm:$0xff] }
 0x228   : > { %1207 = vmatpush1.bf16.msra.mxu0 %v3679_v41  ;;  %1248 = vmatpush1.bf16.msra.mxu1 %v3698_v47 }
 0x229   : > { %1208 = vmatprep.subr.bf16.mxu0 %v3681_v42  ;;  %1249 = vmatprep.subr.bf16.mxu1 %v3701_v48 }
 0x22c   : > { %1209 = vmatpush1.bf16.msra.mxu0 %v3692_v45  ;;  %1250 = vmatpush1.bf16.msra.mxu1 %v3711_v51 }
 0x22d   : > { %1210 = vmatprep.subr.bf16.mxu0 %v3695_v46  ;;  %1251 = vmatprep.subr.bf16.mxu1 %v3714_v52 }
 0x22e   : > { %v2713_v26 = vpop.eup %2712 }
 0x22f   : > { %v2715_v27 = vpop.eup %2714  ;;  %v1066_v28 = vmul.f32 %v2713_v26, %v2711_v24  ;;  %v4226_v24 = vld [vmem:[#allocation41_spill] sm:$0xff]  ;;  %v4228_v26 = vld [vmem:[#allocation42_spill] sm:$0xff] }
 0x230   : > { %v1065_v25 = vmul.f32 %v2715_v27, %v514_v23  ;;  %1211 = vmatpush1.bf16.msra.mxu0 %v3705_v49  ;;  %1252 = vmatpush1.bf16.msra.mxu1 %v3723_v55  ;;  %v2717_v29 = vpop.eup %2716  ;;  %v4227_v23 = vld [vmem:[#allocation38_spill] sm:$0xff]  ;;  %v4230_v27 = vld [vmem:[#allocation43_spill] sm:$0xff] }
 0x231   : > { %1212 = vmatprep.subr.bf16.mxu0 %v3708_v50  ;;  %1253 = vmatprep.subr.bf16.mxu1 %v3726_v56 }
 0x232   : > { %v3833_v30 = vadd.f32 %v1066_v28, %v1065_v25  ;;  %v2250_v28 = vld [vmem:[%s3545_s19 + $0x10] sm:$0xff] }
 0x233   : > { %v1081_v25 = vunpack.c.l.bf16 %v2250_v28 }
 0x234   : > { %2718 = vtanh.f32 %v3833_v30  ;;  %1213 = vmatpush1.bf16.msra.mxu0 %v3717_v53  ;;  %1254 = vmatpush1.bf16.msra.mxu1 %v3735_v59 }
 0x235   : > { %1214 = vmatprep.subr.bf16.mxu0 %v3720_v54  ;;  %1255 = vmatprep.subr.bf16.mxu1 %v3738_v60 }
 0x238   : > { %1215 = vmatpush1.bf16.msra.mxu0 %v4208_v31  ;;  %1256 = vmatpush1.bf16.msra.mxu1 %v3747_v63 }
 0x239   : > { %1216 = vmatprep.subr.bf16.mxu0 %v4209_v33  ;;  %1257 = vmatprep.subr.bf16.mxu1 %v3750_v0 }
 0x23c   : > { %1217 = vmatpush1.bf16.msra.mxu0 %v3741_v61  ;;  %1258 = vmatpush1.bf16.msra.mxu1 %v3757_v36 }
 0x23d   : > { %1218 = vmatprep.subr.bf16.mxu0 %v4210_v34  ;;  %1259 = vmatprep.subr.bf16.mxu1 %v3760_v4 }
 0x23e   : > { %v2719_v22 = vpop.eup %2718 }
 0x23f   : > { %v3848_v21 = vmul.f32 %v2719_v22, %v2717_v29  ;;  %v1082_v29 = vunpack.c.h.bf16 %v2250_v28 }
 0x240   : > { %1219 = vmatpush1.bf16.msra.mxu0 %v3753_v1  ;;  %1260 = vmatpush1.bf16.msra.mxu1 %v3764_v57 }
 0x241   : > { %v1203_v19 = vpack.c.bf16 %v3848_v21, %v3848_v21  ;;  %1328 = vmatprep.subr.bf16.mxu0 %v3572_v2  ;;  %1369 = vmatprep.subr.bf16.mxu1 %v3587_v8  ;;  %v4211_v2 = vld [vmem:[#allocation24_spill] sm:$0xff]  ;;  %v4215_v8 = vld [vmem:[#allocation26_spill] sm:$0xff] }
 0x243   : > { %1237 = vmatmul.mubr.bf16.vlgmr.msra.gmra.mrb[12].mxu0 %v1203_v19  ;;  %1278 = vmatmul.mubr.bf16.vlgmr.msra.gmra.mrb[12].mxu1 %v1203_v19 }
 0x244   : > { %1329 = vmatpush1.bf16.msra.mxu0 %v3574_v3  ;;  %1370 = vmatpush1.bf16.msra.mxu1 %v3589_v9  ;;  %v4212_v3 = vld [vmem:[#allocation28_spill] sm:$0xff]  ;;  %v4217_v9 = vld [vmem:[#allocation27_spill] sm:$0xff] }
 0x245   : > { %1330 = vmatprep.subr.bf16.mxu0 %v3579_v5  ;;  %1371 = vmatprep.subr.bf16.mxu1 %v3599_v12  ;;  %v4213_v5 = vld [vmem:[#allocation25_spill] sm:$0xff] }
 0x246   : > { %1360 = vmatprep.mubr.bf16.mxu0 %v4207_v62  ;;  %1401 = vmatprep.mubr.bf16.mxu1 %v4207_v62 }
 0x248   : > { %1331 = vmatpush1.bf16.msra.mxu0 %v3582_v6  ;;  %1372 = vmatpush1.bf16.msra.mxu1 %v3601_v13  ;;  %v4214_v6 = vld [vmem:[#allocation29_spill] sm:$0xff]  ;;  %v4220_v13 = vld [vmem:[#allocation36_spill] sm:$0xff] }
 0x249   : > { %1332 = vmatprep.subr.bf16.mxu0 %v3585_v7  ;;  %1373 = vmatprep.subr.bf16.mxu1 %v3609_v16  ;;  %v4216_v7 = vld [vmem:[#allocation32_spill] sm:$0xff] }
 0x24c   : > { %1333 = vmatpush1.bf16.msra.mxu0 %v3592_v10  ;;  %1374 = vmatpush1.bf16.msra.mxu1 %v3613_v17  ;;  %v4218_v10 = vld [vmem:[#allocation33_spill] sm:$0xff] }
 0x24d   : > { %1334 = vmatprep.subr.bf16.mxu0 %v3596_v11  ;;  %1375 = vmatprep.subr.bf16.mxu1 %v3616_v18  ;;  %v4219_v11 = vld [vmem:[#allocation30_spill] sm:$0xff] }
 0x250   : > { %1335 = vmatpush1.bf16.msra.mxu0 %v4211_v2  ;;  %1376 = vmatpush1.bf16.msra.mxu1 %v4212_v3 }
 0x251   : > { %1336 = vmatprep.subr.bf16.mxu0 %v4213_v5  ;;  %1377 = vmatprep.subr.bf16.mxu1 %v4214_v6 }
 0x254   : > { %1337 = vmatpush1.bf16.msra.mxu0 %v4215_v8  ;;  %1378 = vmatpush1.bf16.msra.mxu1 %v4216_v7 }
 0x255   : > { %1338 = vmatprep.subr.bf16.mxu0 %v4217_v9  ;;  %1379 = vmatprep.subr.bf16.mxu1 %v4218_v10 }
 0x258   : > { %1339 = vmatpush1.bf16.msra.mxu0 %v4219_v11  ;;  %1380 = vmatpush1.bf16.msra.mxu1 %v4220_v13 }
 0x259   : > { %1340 = vmatprep.subr.bf16.mxu0 %v4221_v39  ;;  %1381 = vmatprep.subr.bf16.mxu1 %v4222_v40 }
 0x25c   : > { %1341 = vmatpush1.bf16.msra.mxu0 %v4223_v32  ;;  %1382 = vmatpush1.bf16.msra.mxu1 %v4224_v58  ;;  %v2251_v32 = vld [vmem:[%s3545_s19 + $0x18] sm:$0xff] }
 0x25d   : > { %1342 = vmatprep.subr.bf16.mxu0 %v4225_v15  ;;  %1383 = vmatprep.subr.bf16.mxu1 %v4226_v24 }
 0x260   : > { %1343 = vmatpush1.bf16.msra.mxu0 %v4227_v23  ;;  %1384 = vmatpush1.bf16.msra.mxu1 %v4228_v26 }
 0x261   : > { %1446 = vmatprep.subr.bf16.mxu0 %v4229_v20  ;;  %1487 = vmatprep.subr.bf16.mxu1 %v4230_v27  ;;  %v1083_v20 = vunpack.c.l.bf16 %v2251_v32  ;;  %v1084_v27 = vunpack.c.h.bf16 %v2251_v32 }
 0x2f6   : > { %v1120_v22 = vpop.f32.mrb[8].mxu0  ;;  %v1161_v19 = vpop.f32.mrb[8].mxu1 }
 0x2f7   : > { %v1168_v2 = vadd.f32 %v1120_v22, %v1081_v25  ;;  %v1122_v5 = vpop.f32.mrb[9].mxu0  ;;  %v1163_v58 = vpop.f32.mrb[9].mxu1  ;;  %v1170_v11 = vadd.f32 %v1161_v19, %v1083_v20 }
 0x2f8   : > { %v1169_v15 = vadd.f32 %v1122_v5, %v1082_v29  ;;  %v1124_v40 = vpop.f32.mrb[10].mxu0  ;;  %v1165_v24 = vpop.f32.mrb[10].mxu1  ;;  %v1171_v28 = vadd.f32 %v1163_v58, %v1084_v27  ;;  %v2256_v5 = vld [vmem:[%s3553_s20 + $0x28] sm:$0xff] }
 0x2f9   : > { %v2252_v39 = vmul.f32 -1.442695, %v1168_v2  ;;  %v1125_v23 = vpop.f32.mrb[11].mxu0  ;;  %v1166_v13 = vpop.f32.mrb[11].mxu1  ;;  %v2254_v10 = vmul.f32 -1.442695, %v1170_v11 }
 0x2fa   : > { %v2253_v26 = vmul.f32 -1.442695, %v1169_v15  ;;  %v2255_v23 = vld [vmem:[%s3553_s20 + $0x20] sm:$0xff] }
 0x2fb   : > { %2720 = vpow2.f32 %v2252_v39  ;;  %v1199_v29 = vunpack.c.l.bf16 %v2255_v23  ;;  %v1200_v20 = vunpack.c.h.bf16 %v2255_v23 }
 0x2fc   : > { %2722 = vpow2.f32 %v2253_v26 }
 0x2fd   : > { %2724 = vtanh.f32 %v1171_v28 }
 0x2fe   : > { %2726 = vpow2.f32 %v2254_v10 }
 0x305   : > { %v2721_v9 = vpop.eup %2720 }
 0x306   : > { %v1181_v25 = vadd.f32 1.0, %v2721_v9  ;;  %v2723_v22 = vpop.eup %2722 }
 0x307   : > { %v1182_v40 = vadd.f32 1.0, %v2723_v22  ;;  %v2725_v24 = vpop.eup %2724 }
 0x308   : > { %2728 = vrcp.f32 %v1181_v25  ;;  %v2727_v13 = vpop.eup %2726 }
 0x309   : > { %2730 = vrcp.f32 %v1182_v40  ;;  %v1183_v32 = vadd.f32 1.0, %v2727_v13 }
 0x30b   : > { %2732 = vrcp.f32 %v1183_v32 }
 0x312   : > { %v2729_v39 = vpop.eup %2728 }
 0x313   : > { %v1192_v15 = vmul.f32 %v2729_v39, %v2725_v24  ;;  %v2731_v26 = vpop.eup %2730  ;;  %v1202_v39 = vunpack.c.h.bf16 %v2256_v5 }
 0x314   : > { %v1191_v11 = vmul.f32 %v2731_v26, %v3807_v35  ;;  %v1201_v35 = vunpack.c.l.bf16 %v2256_v5  ;;  %v1071_v26 = vld [vmem:[#allocation2 + $0x10] sm:$0xff]  ;;  %v2817_v5 = vld [vmem:[#allocation8 + $0xc] ss:$16 sps:$4 sm:$0xff]  }
 0x316   : > { %v1238_v58 = vpop.f32.mrb[12].mxu0  ;;  %v1279_v9 = vpop.f32.mrb[12].mxu1  ;;  %v3894_v27 = vadd.f32 %v1192_v15, %v1191_v11 }
 0x317   : > { %v1286_v10 = vadd.f32 %v1238_v58, %v1199_v29  ;;  %v1240_v19 = vpop.f32.mrb[13].mxu0  ;;  %v1281_v2 = vpop.f32.mrb[13].mxu1  ;;  %v1288_v15 = vadd.f32 %v1279_v9, %v1201_v35  ;;  %v2820_v35 = vld [vmem:[#allocation8 + $0x24] ss:$16 sps:$4 sm:$0xff]  }
 0x318   : > { %v1287_v28 = vadd.f32 %v1240_v19, %v1200_v20  ;;  %v1242_v25 = vpop.f32.mrb[14].mxu0  ;;  %v1283_v22 = vpop.f32.mrb[14].mxu1  ;;  %2734 = vtanh.f32 %v3894_v27  ;;  %v1289_v11 = vadd.f32 %v1281_v2, %v1202_v39  ;;  %v1072_v20 = vmax.f32 %v1071_v26, %v3811_v14  ;;  %v2816_v2 = vld [vmem:[#allocation8 + $0x4] ss:$16 sps:$4 sm:$0xff]   ;;  %v2822_v39 = vld [vmem:[#allocation8 + $0x28] ss:$16 sps:$4 sm:$0xff]  }
 0x319   : > { %v2257_v40 = vmul.f32 -1.442695, %v1286_v10  ;;  %v1243_v24 = vpop.f32.mrb[15].mxu0  ;;  %v1284_v13 = vpop.f32.mrb[15].mxu1  ;;  %v2259_v32 = vmul.f32 -1.442695, %v1288_v15 }
 0x31a   : > { %v2258_v23 = vmul.f32 -1.442695, %v1287_v28  ;;  %v2733_v29 = vpop.eup %2732  ;;  %v2818_v13 = vld [vmem:[#allocation8] ss:$16 sps:$4 sm:$0xff]   ;;  %v2823_v15 = vld [vmem:[#allocation8 + $0x44] ss:$16 sps:$4 sm:$0xff]  }
 0x31b   : > { %2736 = vpow2.f32 %v2257_v40  ;;  %v2824_v26 = vld [vmem:[#allocation8 + $0x40] ss:$16 sps:$4 sm:$0xff]  }
 0x31c   : > { %2738 = vpow2.f32 %v2258_v23  ;;  %v2819_v23 = vld [vmem:[#allocation8 + $0x8] ss:$16 sps:$4 sm:$0xff]  }
 0x31d   : > { %2740 = vtanh.f32 %v1289_v11  ;;  %v2827_v11 = vld [vmem:[#allocation8 + $0x84] ss:$16 sps:$4 sm:$0xff]  }
 0x31e   : > { %2742 = vpow2.f32 %v2259_v32  ;;  %v4235_v32 = vld [vmem:[#allocation31_spill] sm:$0xff] }
 0x322   : > { %v2735_v58 = vpop.eup %2734 }
 0x323   : > { %v1195_v19 = vmul.f32 %v2735_v58, %v2733_v29  ;;  %v2825_v29 = vld [vmem:[#allocation8 + $0x64] ss:$16 sps:$4 sm:$0xff]   ;;  %v4233_v58 = vld [vmem:[#allocation30_spill] sm:$0xff] }
 0x325   : > { %v2737_v25 = vpop.eup %2736  ;;  %v3899_v10 = vmax.f32 %v1072_v20, %v1195_v19  ;;  %v1327_v24 = vpack.c.bf16 %v1195_v19, %v1195_v19  ;;  %v4237_v20 = vld [vmem:[#allocation34_spill] sm:$0xff] }
 0x326   : > { %v1299_v22 = vadd.f32 1.0, %v2737_v25  ;;  %v2739_v28 = vpop.eup %2738  ;;  %v4241_v19 = vld [vmem:[#allocation38_spill] sm:$0xff] }
 0x327   : > { %v1300_v40 = vadd.f32 1.0, %v2739_v28  ;;  %1361 = vmatmul.mubr.bf16.vlgmr.msra.gmra.mrb[16].mxu0 %v1327_v24  ;;  %1402 = vmatmul.mubr.bf16.vlgmr.msra.gmra.mrb[16].mxu1 %v1327_v24  ;;  %v2741_v14 = vpop.eup %2740  ;;  %v4242_v25 = vld [vmem:[#allocation42_spill] sm:$0xff]  ;;  %v4244_v24 = vld [vmem:[#allocation43_spill] sm:$0xff] }
 0x328   : > { %2744 = vrcp.f32 %v1299_v22  ;;  %1447 = vmatpush1.bf16.msra.mxu0 %v3666_v37  ;;  %1488 = vmatpush1.bf16.msra.mxu1 %v3686_v43  ;;  %v2743_v37 = vpop.eup %2742  ;;  %v4243_v22 = vld [vmem:[#allocation39_spill] sm:$0xff] }
 0x329   : > { %2746 = vrcp.f32 %v1300_v40  ;;  %1448 = vmatprep.subr.bf16.mxu0 %v3669_v38  ;;  %1489 = vmatprep.subr.bf16.mxu1 %v3689_v44  ;;  %v2260_v28 = vld [vmem:[%s3545_s19 + $0x20] sm:$0xff] }
 0x32a   : > { %1478 = vmatprep.mubr.bf16.mxu0 %v4207_v62  ;;  %1519 = vmatprep.mubr.bf16.mxu1 %v4207_v62  ;;  %v1323_v40 = vunpack.c.l.bf16 %v2260_v28 }
 0x32c   : > { %1449 = vmatpush1.bf16.msra.mxu0 %v3679_v41  ;;  %1490 = vmatpush1.bf16.msra.mxu1 %v3698_v47  ;;  %v1301_v41 = vadd.f32 1.0, %v2743_v37 }
 0x32d   : > { %1450 = vmatprep.subr.bf16.mxu0 %v3681_v42  ;;  %1491 = vmatprep.subr.bf16.mxu1 %v3701_v48 }
 0x32e   : > { %2748 = vrcp.f32 %v1301_v41 }
 0x330   : > { %1451 = vmatpush1.bf16.msra.mxu0 %v3692_v45  ;;  %1492 = vmatpush1.bf16.msra.mxu1 %v3711_v51  ;;  %v1075_v45 = vld [vmem:[#allocation2 + $0x28] sm:$0xff] }
 0x331   : > { %1452 = vmatprep.subr.bf16.mxu0 %v3695_v46  ;;  %1493 = vmatprep.subr.bf16.mxu1 %v3714_v52 }
 0x332   : > { %v2745_v38 = vpop.eup %2744 }
 0x333   : > { %v1310_v43 = vmul.f32 %v2745_v38, %v2741_v14  ;;  %v2747_v44 = vpop.eup %2746  ;;  %v1324_v14 = vunpack.c.h.bf16 %v2260_v28  ;;  %v2266_v28 = vld [vmem:[%s3553_s20 + $0x18] sm:$0xff] }
 0x334   : > { %v1309_v9 = vmul.f32 %v2747_v44, %v3833_v30  ;;  %1453 = vmatpush1.bf16.msra.mxu0 %v3705_v49  ;;  %1494 = vmatpush1.bf16.msra.mxu1 %v3723_v55 }
 0x335   : > { %1454 = vmatprep.subr.bf16.mxu0 %v3708_v50  ;;  %1495 = vmatprep.subr.bf16.mxu1 %v3726_v56  ;;  %v1076_v50 = vmax.f32 %v1075_v45, %v3848_v21  ;;  %v2821_v21 = vld [vmem:[#allocation8 + $0x20] ss:$16 sps:$4 sm:$0xff]  }
 0x336   : > { %v3920_v42 = vadd.f32 %v1310_v43, %v1309_v9  ;;  %v2261_v9 = vld [vmem:[%s3545_s19 + $0x28] sm:$0xff] }
 0x338   : > { %2750 = vtanh.f32 %v3920_v42  ;;  %1455 = vmatpush1.bf16.msra.mxu0 %v3717_v53  ;;  %1496 = vmatpush1.bf16.msra.mxu1 %v3735_v59  ;;  %v2749_v46 = vpop.eup %2748 }
 0x339   : > { %1456 = vmatprep.subr.bf16.mxu0 %v3720_v54  ;;  %1497 = vmatprep.subr.bf16.mxu1 %v3738_v60 }
 0x33c   : > { %1457 = vmatpush1.bf16.msra.mxu0 %v4208_v31  ;;  %1498 = vmatpush1.bf16.msra.mxu1 %v3747_v63 }
 0x33d   : > { %1458 = vmatprep.subr.bf16.mxu0 %v4209_v33  ;;  %1499 = vmatprep.subr.bf16.mxu1 %v3750_v0 }
 0x340   : > { %1459 = vmatpush1.bf16.msra.mxu0 %v3741_v61  ;;  %1500 = vmatpush1.bf16.msra.mxu1 %v3757_v36 }
 0x341   : > { %1460 = vmatprep.subr.bf16.mxu0 %v4210_v34  ;;  %1501 = vmatprep.subr.bf16.mxu1 %v3760_v4 }
 0x342   : > { %v2751_v49 = vpop.eup %2750 }
 0x343   : > { %v1313_v53 = vmul.f32 %v2751_v49, %v2749_v46 }
 0x344   : > { %1461 = vmatpush1.bf16.msra.mxu0 %v3753_v1  ;;  %1502 = vmatpush1.bf16.msra.mxu1 %v3764_v57 }
 0x345   : > { %v3938_v54 = vmax.f32 %v1076_v50, %v1313_v53  ;;  %v1445_v30 = vpack.c.bf16 %v1313_v53, %v1313_v53  ;;  %1570 = vmatprep.subr.bf16.mxu0 %v2816_v2  ;;  %1611 = vmatprep.subr.bf16.mxu1 %v2817_v5  ;;  %v1325_v5 = vunpack.c.l.bf16 %v2261_v9 }
 0x347   : > { %1479 = vmatmul.mubr.bf16.vlgmr.msra.gmra.mrb[20].mxu0 %v1445_v30  ;;  %1520 = vmatmul.mubr.bf16.vlgmr.msra.gmra.mrb[20].mxu1 %v1445_v30 }
 0x348   : > { %1571 = vmatpush1.bf16.msra.mxu0 %v2818_v13  ;;  %1612 = vmatpush1.bf16.msra.mxu1 %v2819_v23  ;;  %v1326_v13 = vunpack.c.h.bf16 %v2261_v9  ;;  %v1444_v9 = vunpack.c.h.bf16 %v2266_v28 }
 0x349   : > { %1572 = vmatprep.subr.bf16.mxu0 %v2820_v35  ;;  %1613 = vmatprep.subr.bf16.mxu1 %v3599_v12  ;;  %v2826_v12 = vld [vmem:[#allocation8 + $0x60] ss:$16 sps:$4 sm:$0xff]  }
 0x34a   : > { %1602 = vmatprep.mubr.bf16.mxu0 %v4207_v62  ;;  %1643 = vmatprep.mubr.bf16.mxu1 %v4207_v62 }
 0x34c   : > { %1573 = vmatpush1.bf16.msra.mxu0 %v2821_v21  ;;  %1614 = vmatpush1.bf16.msra.mxu1 %v2822_v39 }
 0x34d   : > { %1574 = vmatprep.subr.bf16.mxu0 %v2823_v15  ;;  %1615 = vmatprep.subr.bf16.mxu1 %v3609_v16  ;;  %v4231_v16 = vld [vmem:[#allocation27_spill] sm:$0xff] }
 0x350   : > { %1575 = vmatpush1.bf16.msra.mxu0 %v2824_v26  ;;  %1616 = vmatpush1.bf16.msra.mxu1 %v3613_v17  ;;  %v4232_v17 = vld [vmem:[#allocation33_spill] sm:$0xff] }
 0x351   : > { %1576 = vmatprep.subr.bf16.mxu0 %v2825_v29  ;;  %1617 = vmatprep.subr.bf16.mxu1 %v3616_v18  ;;  %v4234_v18 = vld [vmem:[#allocation36_spill] sm:$0xff] }
 0x354   : > { %1577 = vmatpush1.bf16.msra.mxu0 %v2826_v12  ;;  %1618 = vmatpush1.bf16.msra.mxu1 %v4212_v3  ;;  %v4236_v3 = vld [vmem:[#allocation37_spill] sm:$0xff] }
 0x355   : > { %1578 = vmatprep.subr.bf16.mxu0 %v2827_v11  ;;  %1619 = vmatprep.subr.bf16.mxu1 %v4214_v6  ;;  %v4238_v6 = vld [vmem:[#allocation40_spill] sm:$0xff] }
 0x356   : > { %v2265_v11 = vld [vmem:[%s3553_s20 + $0x10] sm:$0xff] }
 0x358   : > { %1579 = vmatpush1.bf16.msra.mxu0 %v4215_v8  ;;  %1620 = vmatpush1.bf16.msra.mxu1 %v4216_v7  ;;  %v4239_v8 = vld [vmem:[#allocation35_spill] sm:$0xff]  ;;  %v4240_v7 = vld [vmem:[#allocation41_spill] sm:$0xff] }
 0x359   : > { %1580 = vmatprep.subr.bf16.mxu0 %v4231_v16  ;;  %1621 = vmatprep.subr.bf16.mxu1 %v4232_v17 }
 0x35c   : > { %1581 = vmatpush1.bf16.msra.mxu0 %v4233_v58  ;;  %1622 = vmatpush1.bf16.msra.mxu1 %v4234_v18  ;;  %v1441_v18 = vunpack.c.l.bf16 %v2265_v11 }
 0x35d   : > { %1582 = vmatprep.subr.bf16.mxu0 %v4235_v32  ;;  %1623 = vmatprep.subr.bf16.mxu1 %v4236_v3 }
 0x360   : > { %1583 = vmatpush1.bf16.msra.mxu0 %v4237_v20  ;;  %1624 = vmatpush1.bf16.msra.mxu1 %v4238_v6  ;;  %v1442_v20 = vunpack.c.h.bf16 %v2265_v11  ;;  %v2833_v11 = vld [vmem:[#allocation9 + $0x44] ss:$16 sps:$4 sm:$0xff]  }
 0x361   : > { %1584 = vmatprep.subr.bf16.mxu0 %v4239_v8  ;;  %1625 = vmatprep.subr.bf16.mxu1 %v4240_v7 }
 0x364   : > { %1585 = vmatpush1.bf16.msra.mxu0 %v4241_v19  ;;  %1626 = vmatpush1.bf16.msra.mxu1 %v4242_v25 }
 0x365   : > { %1687 = vmatprep.subr.bf16.mxu0 %v4243_v22  ;;  %1728 = vmatprep.subr.bf16.mxu1 %v4244_v24 }
 0x3fa   : > { %v1362_v37 = vpop.f32.mrb[16].mxu0  ;;  %v1403_v38 = vpop.f32.mrb[16].mxu1 }
 0x3fb   : > { %v1410_v43 = vadd.f32 %v1362_v37, %v1323_v40  ;;  %v1364_v44 = vpop.f32.mrb[17].mxu0  ;;  %v1405_v41 = vpop.f32.mrb[17].mxu1  ;;  %v1412_v23 = vadd.f32 %v1403_v38, %v1325_v5 }
 0x3fc   : > { %v1411_v45 = vadd.f32 %v1364_v44, %v1324_v14  ;;  %v1366_v46 = vpop.f32.mrb[18].mxu0  ;;  %v1407_v49 = vpop.f32.mrb[18].mxu1  ;;  %v1413_v35 = vadd.f32 %v1405_v41, %v1326_v13 }
 0x3fd   : > { %v2262_v50 = vmul.f32 -1.442695, %v1410_v43  ;;  %v1367_v53 = vpop.f32.mrb[19].mxu0  ;;  %v1408_v30 = vpop.f32.mrb[19].mxu1  ;;  %v2264_v21 = vmul.f32 -1.442695, %v1412_v23 }
 0x3fe   : > { %v2263_v2 = vmul.f32 -1.442695, %v1411_v45 }
 0x3ff   : > { %2752 = vpow2.f32 %v2262_v50 }
 0x400   : > { %2754 = vpow2.f32 %v2263_v2 }
 0x401   : > { %2756 = vtanh.f32 %v1413_v35 }
 0x402   : > { %2758 = vpow2.f32 %v2264_v21 }
 0x409   : > { %v2753_v39 = vpop.eup %2752 }
 0x40a   : > { %v1423_v15 = vadd.f32 1.0, %v2753_v39  ;;  %v2755_v26 = vpop.eup %2754  ;;  %v2828_v39 = vld [vmem:[#allocation9] ss:$16 sps:$4 sm:$0xff]  }
 0x40b   : > { %v1424_v29 = vadd.f32 1.0, %v2755_v26  ;;  %v2757_v12 = vpop.eup %2756  ;;  %v2830_v26 = vld [vmem:[#allocation9 + $0x24] ss:$16 sps:$4 sm:$0xff]  }
 0x40c   : > { %2760 = vrcp.f32 %v1423_v15  ;;  %v2759_v16 = vpop.eup %2758  ;;  %v2829_v15 = vld [vmem:[#allocation9 + $0x8] ss:$16 sps:$4 sm:$0xff]  }
 0x40d   : > { %2762 = vrcp.f32 %v1424_v29  ;;  %v1425_v3 = vadd.f32 1.0, %v2759_v16  ;;  %v2831_v29 = vld [vmem:[#allocation9 + $0x2c] ss:$16 sps:$4 sm:$0xff]  }
 0x40f   : > { %2764 = vrcp.f32 %v1425_v3 }
 0x416   : > { %v2761_v17 = vpop.eup %2760 }
 0x417   : > { %v1434_v58 = vmul.f32 %v2761_v17, %v2757_v12  ;;  %v2763_v32 = vpop.eup %2762  ;;  %v2832_v12 = vld [vmem:[#allocation9 + $0x20] ss:$16 sps:$4 sm:$0xff]  }
 0x418   : > { %v1433_v6 = vmul.f32 %v2763_v32, %v3894_v27  ;;  %v1443_v27 = vunpack.c.l.bf16 %v2266_v28  ;;  %v2835_v32 = vld [vmem:[#allocation9 + $0x64] ss:$16 sps:$4 sm:$0xff]  }
 0x419   : > { %v2765_v46 = vpop.eup %2764 }
 0x41a   : > { %v1480_v8 = vpop.f32.mrb[20].mxu0  ;;  %v1521_v7 = vpop.f32.mrb[20].mxu1  ;;  %v3968_v19 = vadd.f32 %v1434_v58, %v1433_v6  ;;  %v2834_v58 = vld [vmem:[#allocation9 + $0x40] ss:$16 sps:$4 sm:$0xff]  }
 0x41b   : > { %v1528_v25 = vadd.f32 %v1480_v8, %v1441_v18  ;;  %v1482_v22 = vpop.f32.mrb[21].mxu0  ;;  %v1523_v24 = vpop.f32.mrb[21].mxu1  ;;  %v1530_v45 = vadd.f32 %v1521_v7, %v1443_v27  ;;  %v2836_v6 = vld [vmem:[#allocation9 + $0x60] ss:$16 sps:$4 sm:$0xff]   ;;  %v2271_v7 = vld [vmem:[%s3545_s19 + $0x38] sm:$0xff] }
 0x41c   : > { %v1529_v40 = vadd.f32 %v1482_v22, %v1442_v20  ;;  %v1484_v14 = vpop.f32.mrb[22].mxu0  ;;  %v1525_v37 = vpop.f32.mrb[22].mxu1  ;;  %2766 = vtanh.f32 %v3968_v19  ;;  %v1531_v49 = vadd.f32 %v1523_v24, %v1444_v9 }
 0x41d   : > { %v2267_v38 = vmul.f32 -1.442695, %v1528_v25  ;;  %v1485_v43 = vpop.f32.mrb[23].mxu0  ;;  %v1526_v44 = vpop.f32.mrb[23].mxu1  ;;  %v2269_v53 = vmul.f32 -1.442695, %v1530_v45  ;;  %v1567_v14 = vunpack.c.l.bf16 %v2271_v7  ;;  %v1568_v37 = vunpack.c.h.bf16 %v2271_v7 }
 0x41e   : > { %v2268_v41 = vmul.f32 -1.442695, %v1529_v40 }
 0x41f   : > { %2768 = vpow2.f32 %v2267_v38 }
 0x420   : > { %2770 = vpow2.f32 %v2268_v41 }
 0x421   : > { %2772 = vtanh.f32 %v1531_v49  ;;  %v1680_v49 = vld [vmem:[%s3553_s20] sm:$0xff] }
 0x422   : > { %2774 = vpow2.f32 %v2269_v53 }
 0x426   : > { %v2767_v50 = vpop.eup %2766 }
 0x427   : > { %v3972_v30 = vmul.f32 %v2767_v50, %v2765_v46 }
 0x429   : > { %v2769_v2 = vpop.eup %2768  ;;  %v1557_v13 = vmax.f32 %v3899_v10, %v3972_v30  ;;  %v1569_v23 = vpack.c.bf16 %v3972_v30, %v3972_v30 }
 0x42a   : > { %v1541_v5 = vadd.f32 1.0, %v2769_v2  ;;  %v2771_v35 = vpop.eup %2770 }
 0x42b   : > { %v1542_v21 = vadd.f32 1.0, %v2771_v35  ;;  %1603 = vmatmul.mubr.bf16.vlgmr.msra.gmra.mrb[24].mxu0 %v1569_v23  ;;  %1644 = vmatmul.mubr.bf16.vlgmr.msra.gmra.mrb[24].mxu1 %v1569_v23  ;;  %v2773_v16 = vpop.eup %2772 }
 0x42c   : > { %2776 = vrcp.f32 %v1541_v5  ;;  %1688 = vmatpush1.bf16.msra.mxu0 %v2828_v39  ;;  %1729 = vmatpush1.bf16.msra.mxu1 %v2829_v15  ;;  %v2775_v17 = vpop.eup %2774  ;;  %v1682_v5 = vunpack.c.l.bf16 %v1680_v49 }
 0x42d   : > { %2778 = vrcp.f32 %v1542_v21  ;;  %1689 = vmatprep.subr.bf16.mxu0 %v2830_v26  ;;  %1730 = vmatprep.subr.bf16.mxu1 %v2831_v29  ;;  %v1543_v20 = vadd.f32 1.0, %v2775_v17  ;;  %v1683_v21 = vunpack.c.h.bf16 %v1680_v49  ;;  %v1681_v17 = vld [vmem:[%s3553_s20 + $0x8] sm:$0xff]  ;;  %v1817_v49 = vld [vmem:[#allocation11 + $0x20] sm:$0xff] (!%p2278_p2) }
 0x42e   : > { %1719 = vmatprep.mubr.bf16.mxu0 %v4207_v62  ;;  %1760 = vmatprep.mubr.bf16.mxu1 %v4207_v62 }
 0x42f   : > { %2780 = vrcp.f32 %v1543_v20 }
 0x430   : > { %1690 = vmatpush1.bf16.msra.mxu0 %v2832_v12  ;;  %1731 = vmatpush1.bf16.msra.mxu1 %v3698_v47 }
 0x431   : > { %1691 = vmatprep.subr.bf16.mxu0 %v2833_v11  ;;  %1732 = vmatprep.subr.bf16.mxu1 %v3701_v48  ;;  %v2837_v48 = vld [vmem:[#allocation9 + $0x84] ss:$16 sps:$4 sm:$0xff]  }
 0x434   : > { %1692 = vmatpush1.bf16.msra.mxu0 %v2834_v58  ;;  %1733 = vmatpush1.bf16.msra.mxu1 %v3711_v51  ;;  %v2838_v51 = vld [vmem:[#allocation9 + $0x80] ss:$16 sps:$4 sm:$0xff]  }
 0x435   : > { %1693 = vmatprep.subr.bf16.mxu0 %v2835_v32  ;;  %1734 = vmatprep.subr.bf16.mxu1 %v3714_v52  ;;  %v2839_v52 = vld [vmem:[#allocation9 + $0xa4] ss:$16 sps:$4 sm:$0xff]  }
 0x436   : > { %v2777_v18 = vpop.eup %2776 }
 0x437   : > { %v1552_v62 = vmul.f32 %v2777_v18, %v2773_v16  ;;  %v2779_v3 = vpop.eup %2778 }
 0x438   : > { %v1551_v47 = vmul.f32 %v2779_v3, %v3920_v42  ;;  %1694 = vmatpush1.bf16.msra.mxu0 %v2836_v6  ;;  %1735 = vmatpush1.bf16.msra.mxu1 %v3723_v55  ;;  %v1684_v6 = vunpack.c.l.bf16 %v1681_v17 }
 0x439   : > { %1695 = vmatprep.subr.bf16.mxu0 %v2837_v48  ;;  %1736 = vmatprep.subr.bf16.mxu1 %v3726_v56  ;;  %v2781_v55 = vpop.eup %2780 }
 0x43a   : > { %v3987_v8 = vadd.f32 %v1552_v62, %v1551_v47 }
 0x43c   : > { %2782 = vtanh.f32 %v3987_v8  ;;  %1696 = vmatpush1.bf16.msra.mxu0 %v2838_v51  ;;  %1737 = vmatpush1.bf16.msra.mxu1 %v3735_v59 }
 0x43d   : > { %1697 = vmatprep.subr.bf16.mxu0 %v2839_v52  ;;  %1738 = vmatprep.subr.bf16.mxu1 %v3738_v60 }
 0x440   : > { %1698 = vmatpush1.bf16.msra.mxu0 %v4208_v31  ;;  %1739 = vmatpush1.bf16.msra.mxu1 %v3747_v63  ;;  %v2270_v63 = vld [vmem:[%s3545_s19 + $0x30] sm:$0xff] }
 0x441   : > { %1699 = vmatprep.subr.bf16.mxu0 %v4209_v33  ;;  %1740 = vmatprep.subr.bf16.mxu1 %v3750_v0  ;;  %v1565_v0 = vunpack.c.l.bf16 %v2270_v63 }
 0x444   : > { %1700 = vmatpush1.bf16.msra.mxu0 %v3741_v61  ;;  %1741 = vmatpush1.bf16.msra.mxu1 %v3757_v36  ;;  %v1566_v36 = vunpack.c.h.bf16 %v2270_v63 }
 0x445   : > { %1701 = vmatprep.subr.bf16.mxu0 %v4210_v34  ;;  %1742 = vmatprep.subr.bf16.mxu1 %v3760_v4 }
 0x446   : > { %v2783_v56 = vpop.eup %2782 }
 0x447   : > { %v4000_v59 = vmul.f32 %v2783_v56, %v2781_v55 }
 0x448   : > { %1702 = vmatpush1.bf16.msra.mxu0 %v3753_v1  ;;  %1743 = vmatpush1.bf16.msra.mxu1 %v3764_v57 }
 0x449   : > { %v1560_v60 = vmax.f32 %v3938_v54, %v4000_v59  ;;  %v1686_v61 = vpack.c.bf16 %v4000_v59, %v4000_v59  ;;  %v1815_v54 = vld [vmem:[#allocation11 + $0x10] sm:$0xff] (!%p2278_p2)  ;;  %v1816_v59 = vld [vmem:[#allocation11 + $0x18] sm:$0xff] (!%p2278_p2) }
 0x44b   : > { %1720 = vmatmul.mubr.bf16.vlgmr.msra.gmra.mrb[28].mxu0 %v1686_v61  ;;  %1761 = vmatmul.mubr.bf16.vlgmr.msra.gmra.mrb[28].mxu1 %v1686_v61 }
 0x4fe   : > { %v1604_v4 = vpop.f32.mrb[24].mxu0  ;;  %v1645_v31 = vpop.f32.mrb[24].mxu1 }
 0x4ff   : > { %v1652_v33 = vadd.f32 %v1604_v4, %v1565_v0  ;;  %v1606_v34 = vpop.f32.mrb[25].mxu0  ;;  %v1647_v42 = vpop.f32.mrb[25].mxu1  ;;  %v1654_v38 = vadd.f32 %v1645_v31, %v1567_v14  ;;  %v1813_v14 = vld [vmem:[#allocation11] sm:$0xff] (!%p2278_p2) }
 0x500   : > { %v1653_v1 = vadd.f32 %v1606_v34, %v1566_v36  ;;  %v1608_v25 = vpop.f32.mrb[26].mxu0  ;;  %v1649_v57 = vpop.f32.mrb[26].mxu1  ;;  %v1655_v43 = vadd.f32 %v1647_v42, %v1568_v37 }
 0x501   : > { %v2272_v22 = vmul.f32 -1.442695, %v1652_v33  ;;  %v1609_v24 = vpop.f32.mrb[27].mxu0  ;;  %v1650_v28 = vpop.f32.mrb[27].mxu1  ;;  %v2274_v44 = vmul.f32 -1.442695, %v1654_v38 }
 0x502   : > { %v2273_v40 = vmul.f32 -1.442695, %v1653_v1  ;;  %v1829_v28 = vld [vmem:[#allocation12] sm:$0xff] (!%p2278_p2)  ;;  %v1814_v38 = vld [vmem:[#allocation11 + $0x8] sm:$0xff] (!%p2278_p2) }
 0x503   : > { %2784 = vpow2.f32 %v2272_v22 }
 0x504   : > { %2786 = vpow2.f32 %v2273_v40  ;;  %v1830_v40 = vld [vmem:[#allocation12 + $0x8] sm:$0xff] (!%p2278_p2) }
 0x505   : > { %2788 = vtanh.f32 %v1655_v43  ;;  %v2393_v37 = vpack.c.bf16 (!%p2278_p2), %v1830_v40, %v1829_v28  ;;  %v1831_v43 = vld [vmem:[#allocation12 + $0x10] sm:$0xff] (!%p2278_p2) }
 0x506   : > { %2790 = vpow2.f32 %v2274_v44  ;;  %v1832_v44 = vld [vmem:[#allocation12 + $0x18] sm:$0xff] (!%p2278_p2) }
 0x50d   : > { %v2785_v41 = vpop.eup %2784 }
 0x50e   : > { %v1665_v27 = vadd.f32 1.0, %v2785_v41  ;;  %v2787_v9 = vpop.eup %2786  ;;  %v2417_v41 = vpack.c.bf16 (!%p2278_p2), %v1814_v38, %v1813_v14 }
 0x50f   : > { %v1666_v45 = vadd.f32 1.0, %v2787_v9  ;;  %v2789_v46 = vpop.eup %2788  ;;  %v2420_v9 = vpack.c.bf16 (!%p2278_p2), %v1816_v59, %v1815_v54 }
 0x510   : > { %2792 = vrcp.f32 %v1665_v27  ;;  %v2791_v50 = vpop.eup %2790  ;;  %v2396_v27 = vpack.c.bf16 (!%p2278_p2), %v1832_v44, %v1831_v43 }
 0x511   : > { %2794 = vrcp.f32 %v1666_v45  ;;  %v1667_v35 = vadd.f32 1.0, %v2791_v50  ;;  %v1833_v45 = vld [vmem:[#allocation12 + $0x20] sm:$0xff] (!%p2278_p2)  ;;  %v1818_v50 = vld [vmem:[#allocation11 + $0x28] sm:$0xff] (!%p2278_p2) }
 0x513   : > { %2796 = vrcp.f32 %v1667_v35  ;;  %v1819_v35 = vld [vmem:[#allocation11 + $0x30] sm:$0xff] (!%p2278_p2) }
 0x51a   : > { %v2793_v53 = vpop.eup %2792 }
 0x51b   : > { %v1676_v2 = vmul.f32 %v2793_v53, %v2789_v46  ;;  %v2795_v23 = vpop.eup %2794  ;;  %v1834_v46 = vld [vmem:[#allocation12 + $0x28] sm:$0xff] (!%p2278_p2) }
 0x51c   : > { %v1675_v39 = vmul.f32 %v2795_v23, %v3968_v19  ;;  %v1685_v19 = vunpack.c.h.bf16 %v1681_v17  ;;  %v2399_v53 = vpack.c.bf16 (!%p2278_p2), %v1834_v46, %v1833_v45  ;;  %v1836_v23 = vld [vmem:[#allocation12 + $0x38] sm:$0xff] (!%p2278_p2) }
 0x51d   : > { %v2797_v51 = vpop.eup %2796 }
 0x51e   : > { %v1721_v15 = vpop.f32.mrb[28].mxu0  ;;  %v1762_v26 = vpop.f32.mrb[28].mxu1  ;;  %v1677_v29 = vadd.f32 %v1676_v2, %v1675_v39  ;;  %v2423_v2 = vpack.c.bf16 (!%p2278_p2), %v1818_v50, %v1817_v49 }
 0x51f   : > { %v1769_v12 = vadd.f32 %v1721_v15, %v1682_v5  ;;  %v1723_v11 = vpop.f32.mrb[29].mxu0  ;;  %v1764_v16 = vpop.f32.mrb[29].mxu1  ;;  %v1771_v48 = vadd.f32 %v1762_v26, %v1684_v6  ;;  %v1835_v5 = vld [vmem:[#allocation12 + $0x30] sm:$0xff] (!%p2278_p2)  ;;  %v1837_v26 = vld [vmem:[#allocation12 + $0x40] sm:$0xff] (!%p2278_p2)  ;;  %v1842_v6 = vld [vmem:[#allocation12 + $0x68] sm:$0xff] (!%p2278_p2) }
 0x520   : > { %v1770_v58 = vadd.f32 %v1723_v11, %v1683_v21  ;;  %v1725_v18 = vpop.f32.mrb[30].mxu0  ;;  %v1766_v32 = vpop.f32.mrb[30].mxu1  ;;  %2798 = vtanh.f32 %v1677_v29  ;;  %1804 = vst [vmem:[#allocation2 + $0x8] sm:$0xff] %v1677_v29  ;;  %v1772_v52 = vadd.f32 %v1764_v16, %v1685_v19  ;;  %v1820_v21 = vld [vmem:[#allocation11 + $0x38] sm:$0xff] (!%p2278_p2)  ;;  %v2402_v39 = vpack.c.bf16 (!%p2278_p2), %v1836_v23, %v1835_v5  ;;  %v1838_v29 = vld [vmem:[#allocation12 + $0x48] sm:$0xff] (!%p2278_p2)  ;;  %v1825_v19 = vld [vmem:[#allocation11 + $0x60] sm:$0xff] (!%p2278_p2) }
 0x521   : > { %v2275_v62 = vmul.f32 -1.442695, %v1769_v12  ;;  %v1726_v3 = vpop.f32.mrb[31].mxu0  ;;  %v1767_v20 = vpop.f32.mrb[31].mxu1  ;;  %v2277_v56 = vmul.f32 -1.442695, %v1771_v48  ;;  %v2426_v15 = vpack.c.bf16 (!%p2278_p2), %v1820_v21, %v1819_v35  ;;  %v2405_v16 = vpack.c.bf16 (!%p2278_p2), %v1838_v29, %v1837_v26 }
 0x522   : > { %v2276_v47 = vmul.f32 -1.442695, %v1770_v58  ;;  %v1821_v12 = vld [vmem:[#allocation11 + $0x40] sm:$0xff] (!%p2278_p2)  ;;  %v1822_v11 = vld [vmem:[#allocation11 + $0x48] sm:$0xff] (!%p2278_p2)  ;;  %v1839_v58 = vld [vmem:[#allocation12 + $0x50] sm:$0xff] (!%p2278_p2) }
 0x523   : > { %2800 = vpow2.f32 %v2275_v62  ;;  %v2429_v17 = vpack.c.bf16 (!%p2278_p2), %v1822_v11, %v1821_v12  ;;  %v1840_v18 = vld [vmem:[#allocation12 + $0x58] sm:$0xff] (!%p2278_p2)  ;;  %v1823_v32 = vld [vmem:[#allocation11 + $0x50] sm:$0xff] (!%p2278_p2)  ;;  %v1826_v48 = vld [vmem:[#allocation11 + $0x68] sm:$0xff] (!%p2278_p2) }
 0x524   : > { %2802 = vpow2.f32 %v2276_v47  ;;  %v1824_v62 = vld [vmem:[#allocation11 + $0x58] sm:$0xff] (!%p2278_p2)  ;;  %v2408_v3 = vpack.c.bf16 (!%p2278_p2), %v1840_v18, %v1839_v58  ;;  %v1841_v47 = vld [vmem:[#allocation12 + $0x60] sm:$0xff] (!%p2278_p2) }
 0x525   : > { %2804 = vtanh.f32 %v1772_v52  ;;  %v2432_v20 = vpack.c.bf16 (!%p2278_p2), %v1824_v62, %v1823_v32  ;;  %v2435_v52 = vpack.c.bf16 (!%p2278_p2), %v1826_v48, %v1825_v19 }
 0x526   : > { %2806 = vpow2.f32 %v2277_v56  ;;  %v1844_v56 = vld [vmem:[#allocation12 + $0x78] sm:$0xff] (!%p2278_p2) }
 0x52a   : > { %v2799_v55 = vpop.eup %2798 }
 0x52b   : > { %v1679_v61 = vmul.f32 %v2799_v55, %v2797_v51  ;;  %v2411_v51 = vpack.c.bf16 (!%p2278_p2), %v1842_v6, %v1841_v47  ;;  %v1843_v55 = vld [vmem:[#allocation12 + $0x70] sm:$0xff] (!%p2278_p2) }
 0x52d   : > { %v2801_v63 = vpop.eup %2800  ;;  %v1798_v0 = vmax.f32 %v1557_v13, %v1679_v61  ;;  %1803 = vst [vmem:[#allocation2] sm:$0xff] %v1679_v61  ;;  %v1827_v61 = vld [vmem:[#allocation11 + $0x70] sm:$0xff] (!%p2278_p2) }
 0x52e   : > { %v1782_v36 = vadd.f32 1.0, %v2801_v63  ;;  %v2803_v4 = vpop.eup %2802  ;;  %v1828_v63 = vld [vmem:[#allocation11 + $0x78] sm:$0xff] (!%p2278_p2) }
 0x52f   : > { %1799 = vst [vmem:[#allocation2 + $0x10] sm:$0xff] %v1798_v0  ;;  %v1783_v31 = vadd.f32 1.0, %v2803_v4  ;;  %v2805_v33 = vpop.eup %2804  ;;  %v2414_v0 = vpack.c.bf16 (!%p2278_p2), %v1844_v56, %v1843_v55 }
 0x530   : > { %2808 = vrcp.f32 %v1782_v36  ;;  %v2807_v34 = vpop.eup %2806  ;;  %v2438_v36 = vpack.c.bf16 (!%p2278_p2), %v1828_v63, %v1827_v61 }
 0x531   : > { %2810 = vrcp.f32 %v1783_v31  ;;  %v1784_v25 = vadd.f32 1.0, %v2807_v34 }
 0x533   : > { %2812 = vrcp.f32 %v1784_v25 }
 0x536   : > { %v1811_v31 = vld [vmem:[#allocation2 + $0x10] sm:$0xff] (!%p2278_p2) }
 0x53a   : > { %v2809_v42 = vpop.eup %2808 }
 0x53b   : > { %v1793_v7 = vmul.f32 %v2809_v42, %v2805_v33  ;;  %v2811_v1 = vpop.eup %2810 }
 0x53c   : > { %v1792_v57 = vmul.f32 %v2811_v1, %v3987_v8  ;;  %v3180_v8 = vmov (!%p2278_p2), 0.0|0.0  }
 0x53d   : > { %v2813_v10 = vpop.eup %2812  ;;  %2392 = vmatprep.subr.bf16.mxu0 (!%p2278_p2), %v3180_v8  ;;  %2416 = vmatprep.subr.bf16.mxu1 (!%p2278_p2), %v3180_v8 }
 0x53e   : > { %v1794_v22 = vadd.f32 %v1793_v7, %v1792_v57  ;;  %2394 = vmatpush3.bf16.msra.mxu0 (!%p2278_p2), %v2393_v37  ;;  %2418 = vmatpush3.bf16.msra.mxu1 (!%p2278_p2), %v2417_v41  ;;  %v2279_v7 = vld [vmem:[#allocation14] ss:$0 sm:$0xff] (!%p2278_p2) }
 0x53f   : > { %2395 = vmatprep.subr.bf16.mxu0 (!%p2278_p2), %v3180_v8  ;;  %2419 = vmatprep.subr.bf16.mxu1 (!%p2278_p2), %v3180_v8 }
 0x540   : > { %2814 = vtanh.f32 %v1794_v22  ;;  %1806 = vst [vmem:[#allocation2 + $0x20] sm:$0xff] %v1794_v22 }
 0x542   : > { %2397 = vmatpush3.bf16.msra.mxu0 (!%p2278_p2), %v2396_v27  ;;  %2421 = vmatpush3.bf16.msra.mxu1 (!%p2278_p2), %v2420_v9 }
 0x543   : > { %2398 = vmatprep.subr.bf16.mxu0 (!%p2278_p2), %v3180_v8  ;;  %2422 = vmatprep.subr.bf16.mxu1 (!%p2278_p2), %v3180_v8 }
 0x546   : > { %2400 = vmatpush3.bf16.msra.mxu0 (!%p2278_p2), %v2399_v53  ;;  %2424 = vmatpush3.bf16.msra.mxu1 (!%p2278_p2), %v2423_v2 }
 0x547   : > { %2401 = vmatprep.subr.bf16.mxu0 (!%p2278_p2), %v3180_v8  ;;  %2425 = vmatprep.subr.bf16.mxu1 (!%p2278_p2), %v3180_v8 }
 0x549   : > { %1810 = sbr.rel (%p2278_p2) target bundleno = 1907 (0x773), region = 84 }
 0x54a   : > { %v2815_v30 = vpop.eup %2814  ;;  %2403 = vmatpush3.bf16.msra.mxu0 (!%p2278_p2), %v2402_v39  ;;  %2427 = vmatpush3.bf16.msra.mxu1 (!%p2278_p2), %v2426_v15 }
 0x54b   : > { %v1796_v13 = vmul.f32 %v2815_v30, %v2813_v10  ;;  %2404 = vmatprep.subr.bf16.mxu0 (!%p2278_p2), %v3180_v8  ;;  %2428 = vmatprep.subr.bf16.mxu1 (!%p2278_p2), %v3180_v8 }
 0x54d   : > { %v1801_v24 = vmax.f32 %v1560_v60, %v1796_v13  ;;  %1805 = vst [vmem:[#allocation2 + $0x18] sm:$0xff] %v1796_v13  ;;  %v3182_v60 = vmov (!%p2278_p2), 0.0  }
 0x54e   : > { %2354 = vmatprep.mubr.msk.f32.mxu0 (!%p2278_p2), %vm3181_vm0, %v3182_v60  ;;  %2389 = vmatprep.mubr.msk.f32.mxu1 (!%p2278_p2), %vm3181_vm0, %v3182_v60 }
 0x54f   : > { %1802 = vst [vmem:[#allocation2 + $0x28] sm:$0xff] %v1801_v24  ;;  %2406 = vmatpush3.bf16.msra.mxu0 (!%p2278_p2), %v2405_v16  ;;  %2430 = vmatpush3.bf16.msra.mxu1 (!%p2278_p2), %v2429_v17 }
 0x550   : > { %2407 = vmatprep.subr.bf16.mxu0 %v3180_v8  ;;  %2431 = vmatprep.subr.bf16.mxu1 %v3180_v8 }
 0x553   : > { %2409 = vmatpush3.bf16.msra.mxu0 %v2408_v3  ;;  %2433 = vmatpush3.bf16.msra.mxu1 %v2432_v20 }
 0x554   : > { %2410 = vmatprep.subr.bf16.mxu0 %v3180_v8  ;;  %2434 = vmatprep.subr.bf16.mxu1 %v3180_v8 }
 0x556   : > { %v1812_v4 = vld [vmem:[#allocation2 + $0x28] sm:$0xff] }
 0x557   : > { %2412 = vmatpush3.bf16.msra.mxu0 %v2411_v51  ;;  %2436 = vmatpush3.bf16.msra.mxu1 %v2435_v52 }
 0x558   : > { %2413 = vmatprep.subr.bf16.mxu0 %v3180_v8  ;;  %2437 = vmatprep.subr.bf16.mxu1 %v3180_v8 }
 0x55b   : > { %2415 = vmatpush3.bf16.msra.mxu0 %v2414_v0  ;;  %2439 = vmatpush3.bf16.msra.mxu1 %v2438_v36 }
 0x55e   : > { %2355 = vmatmul.mubr.f32.vlgmr.msra.gmra.mrb[0].mxu0 %v1812_v4  ;;  %2390 = vmatmul.mubr.f32.vlgmr.msra.gmra.mrb[0].mxu1 %v1811_v31 }
 0x631   : > { %v1911_v33 = vpop.f32.mrb[0].mxu0  ;;  %v1981_v34 = vpop.f32.mrb[0].mxu1 }
 0x632   : > { %v2356_v42 = vpop.f32.mrb[1].mxu0  ;;  %v1982_v1 = vadd.f32 %v1981_v34, %v1911_v33  ;;  %v2391_v25 = vpop.f32.mrb[1].mxu1 }
 0x634   : > { %v1992_v57 = vadd.f32 %v2279_v7, %v1982_v1 }
 0x636   : > { %v1994_v22 = vsel %vm1993_vm1, %v1992_v57, -inf }
 0x637   : > { %1995 = vmax.xlane.f32.xlu0 %v1994_v22 }
 0x6c4   : > { %v1996_v10 = vpop.xlane.xlu0 %1995 }
 0x6c5   : > { %v1997_v30 = vsub.f32 %v1992_v57, %v1996_v10 }
 0x6c7   : > { %v1998_v13 = vmul.f32 1.442695, %v1997_v30 }
 0x6c9   : > { %2840 = vpow2.f32 %v1998_v13 }
 0x6d3   : > { %v2841_v24 = vpop.eup %2840 }
 0x6d4   : > { %v2000_v28 = vsel %vm1993_vm1, %v2841_v24, 0.0 }
 0x6d5   : > { %2001 = vadd.xlane.f32.xlu0 %v2000_v28 }
 0x762   : > { %v2002_v40 = vpop.xlane.xlu0 %2001 }
 0x763   : > { %2842 = vlog2.f32 %v2002_v40 }
 0x76d   : > { %v2843_v14 = vpop.eup %2842 }
 0x76e   : > { %v2004_v8 = vmul.f32 0.6931472, %v2843_v14 }
 0x770   : > { %v2005_v37 = vsub.f32 %v1997_v30, %v2004_v8 }
 0x772   : > { %2006 = vst.msk [vmem:[#allocation15] sm:$0xff] %vm1993_vm1, %v2005_v37 }
 0x773 PF: > { %p2502_p1 = scmp.eq.s32.totalorder %s3270_s10, 1  ;;  %s3183_s2 = smov [#allocation15]  }
 0x774   : > { %s2016_s21 = sshll.u32 %s3183_s2, 4  ;;  %s2017_s21 = int_to_ptr.vmem [resolvable:$true] %s2016_s21 }
 0x775   : > { %s3044_s27 = scalar_lea.vmem %s2017_s21, 128  ;;  %p3051_p7 = scmp.lt.s32.totalorder %s2017_s21, %s2017_s21 }
 0x776   : > { %p3045_p3 = scmp.ne.s32.totalorder %s2017_s21, %s3044_s27  ;;  %p3052_p5 = scmp.lt.s32.totalorder %s3044_s27, %s3044_s27 }
 0x778   : > { %p3046_p9 = pnand %p3045_p3, %p2502_p1  ;;  %p3053_p13 = por %p3052_p5, %p3051_p7 }
 0x77a   : > { %p3047_p0 = pneg %p3046_p9 }
 0x77c   : > { %p3054_p6 = pnand %p3053_p13, %p3047_p0 }
 0x77e   : > { %3057 = shalt.err (!%p3054_p6)
}
 0x77f   : > { %s4246_s24 = sld [smem:[#allocation48_spill]] }
 0x785   : > { %s4247_s7 = smov %s4246_s24  ;;  %s3058_s19 = scalar_lea.hbm %s4246_s24, 128 }
 0x786   : > { %p3059_p11 = scmp.ne.s32.totalorder %s4247_s7, %s3058_s19  ;;  %p3064_p10 = scmp.lt.u32.totalorder %s3058_s19, %s4247_s7 }
 0x788   : > { %p3060_p4 = pnand %p3059_p11, %p2502_p1 }
 0x78a   : > { %p3061_p8 = pneg %p3060_p4 }
 0x78c   : > { %p3066_p12 = pnand %p3064_p10, %p3061_p8 }
 0x78e   : > { %3069 = shalt.err (!%p3066_p12)
}
 0x78f   : > { %2465 = dma.vmem_to_hbm [thread:$0]  (%p2502_p1), %s2017_s21, 128, %s4247_s7, [#allocation5]  }
 0x790   : > { %3127 = dma.done.wait (%p2502_p1), [#allocation5], 128  }
 0x791   : > { %3129 = vsyncadd (%p2502_p1), [#allocation5], 4294967168 }
 0x792 PF: > { %s26_s9 = sadd.s32 1, %s3164_s9   ;;  %s4248_s24 = smov %s3136_s25 }
 0x793   : > { %p23_p2 = scmp.ge.s32.totalorder %s26_s9, 4   ;;  %s4249_s25 = smov %s3140_s26 }
 0x794   : > { %s4250_s26 = smov %s3487_s12  ;;  %s4251_s27 = smov %s3148_s28 }
 0x795   : > { %s4252_s28 = smov %s3152_s29  ;;  %s4253_s29 = smov %s3430_s13 }
 0x796   : > { %s4254_s30 = smov %s3160_s8  ;;  %s4255_s8 = smov %s4257_s22 }
 0x797   :  { %25 = sbr.rel (!%p23_p2) target bundleno = 14 (0xe), region = 143 }
 0x79e   :  { %2029 = vsyncpa [#allocation4], 1 }
 0x79f   :  { %2031 = vsyncpa [#allocation4 + $0x1], 1 }
 0x7a0   :  { %2032 = vsyncpa [#allocation7], 1 }
 0x7a1   :  { %2034 = vsyncpa [#allocation7 + $0x1], 1 }
 0x7a2   :  { %2035 = vsyncpa [#allocation10], 1 }
 0x7a3   :  { %2036 = vsyncpa [#allocation13], 1 }
 0x7a4   :  { %2037 = vsyncpa [#allocation5], 1 }
 0x7a5   :  { %2039 = vsyncpa [#allocation5 + $0x1], 1 }

</bundles_post_ra>
